<compile_context>
chip_gen: v7x
topology: tpu7x:2x2x1
jax: 0.10.0
libtpu: 0.0.40
codegen_flags: <defaults>
</compile_context>

<pallas_src>
import functools
import math

import jax
import jax.numpy as jnp
from jax.experimental import pallas as pl
from jax.experimental.pallas import tpu as pltpu

PAD = 0.0                       # stand-in for onmt.constants.PAD
MODEL_SIZE = 32                 # opt.model_size (real feature dim)
N_HEADS = 4
HEAD_DIM = MODEL_SIZE // N_HEADS        # 8
FFN_INNER = 4 * MODEL_SIZE              # 128 (already lane-dense)
LN_EPS = 1e-5

DP = 128                        # model dim zero-padded to the 128-lane width
HEAD_PAD = 128                  # each head gets its own 128-lane block
HB = N_HEADS * HEAD_PAD         # 512: head-blocked Q/K/V width


# ----------------------------------------------------------------------------
# Fused kernel: encoder stand-in + gate layer + postprocess LN for one batch
# element.  All activations carry DP=128 lanes with real data in lanes [0, 32)
# and exact zeros elsewhere (guaranteed by zero-padded weights / LN params).
# ----------------------------------------------------------------------------
def _discourse_kernel(cur_in_ref, past_in_ref, bias_ref, ln_ref,
                      emb_w_ref, emb_b_ref,
                      wq_ref, bq_ref, wkv_ref, bkv_ref, wo_ref, bo_ref,
                      wg_cur_ref, wg_attn_ref, bg_ref,
                      wf1_ref, bf1_ref, wf2_ref, bf2_ref,
                      o_ref, *, n_heads, head_pad, d_real):
    f32 = jnp.float32
    bf16 = jnp.bfloat16
    lnp = ln_ref[...]                                   # [8, DP] packed LN params

    def layer_norm(x, idx):
        # Padded lanes of x are exactly zero, so sums over all DP lanes equal
        # sums over the d_real real lanes; gamma/beta are zero on padded lanes
        # so the output padded lanes stay exactly zero.
        g = lnp[2 * idx:2 * idx + 1, :]
        b = lnp[2 * idx + 1:2 * idx + 2, :]
        inv_d = 1.0 / d_real
        mean = jnp.sum(x, axis=-1, keepdims=True) * inv_d
        msq = jnp.sum(x * x, axis=-1, keepdims=True) * inv_d
        var = jnp.maximum(msq - mean * mean, 0.0)
        return (x - mean) * jax.lax.rsqrt(var + LN_EPS) * g + b

    def dense(x, w_ref_, b_ref_):
        return jnp.dot(x.astype(bf16), w_ref_[...],
                       preferred_element_type=f32) + b_ref_[...]

    # ---- stand-in encoder (shared weights) on current and past inputs ------
    cur = layer_norm(dense(cur_in_ref[...], emb_w_ref, emb_b_ref), 0)    # [T, DP]
    past = layer_norm(dense(past_in_ref[...], emb_w_ref, emb_b_ref), 0)  # [Tp, DP]

    # ---- masked multi-head cross-attention over the past context -----------
    # TODO(synk): relative-position bias (pos_emb) and mask_src query masking
    # of RelativeGateEncoderLayer are not reproduced.
    scale = 1.0 / math.sqrt(HEAD_DIM)
    q = dense(layer_norm(cur, 1), wq_ref, bq_ref) * scale                # [T, HB]
    kv = dense(past, wkv_ref, bkv_ref)                                   # [Tp, 2*HB]
    qb = q.astype(bf16)
    kb = kv[:, :n_heads * head_pad].astype(bf16)
    vb = kv[:, n_heads * head_pad:].astype(bf16)
    bias = bias_ref[...]                                 # [1, Tp] additive key-pad bias

    o_parts = []
    for h in range(n_heads):                             # static, unrolled
        sl = slice(h * head_pad, (h + 1) * head_pad)     # 128-aligned lane block
        s = jax.lax.dot_general(qb[:, sl], kb[:, sl],
                                (((1,), (1,)), ((), ())),
                                preferred_element_type=f32) + bias       # [T, Tp]
        m = jnp.max(s, axis=-1, keepdims=True)
        e = jnp.exp(s - m)
        p = e * pl.reciprocal(jnp.sum(e, axis=-1, keepdims=True), approx=True)
        o_parts.append(jnp.dot(p.astype(bf16), vb[:, sl],
                               preferred_element_type=f32))              # [T, HEAD_PAD]
    o_all = jnp.concatenate(o_parts, axis=-1)            # [T, HB] (128-aligned concat)
    attn = jnp.dot(o_all.astype(bf16), wo_ref[...],
                   preferred_element_type=f32) + bo_ref[...]             # [T, DP]

    # ---- sigmoid gate over [current ; attended-past], split weight ----------
    gate = jax.nn.sigmoid(
        jnp.dot(cur.astype(bf16), wg_cur_ref[...], preferred_element_type=f32)
        + jnp.dot(attn.astype(bf16), wg_attn_ref[...], preferred_element_type=f32)
        + bg_ref[...])
    gated = gate * cur + (1.0 - gate) * attn

    # ---- pre-LN feed-forward with residual ----------------------------------
    hidden = jnp.maximum(dense(layer_norm(gated, 2), wf1_ref, bf1_ref), 0.0)
    out = gated + dense(hidden, wf2_ref, bf2_ref)

    # ---- postprocess_layer: PrePostProcessing(..., sequence='n') ------------
    # Written time-major, lane-dense (128 lanes).
    o_ref[...] = layer_norm(out, 3).astype(o_ref.dtype)


# ----------------------------------------------------------------------------
# Wrappers
# ----------------------------------------------------------------------------
def discourse_forward_fused(params, inp, past_inp):
    """One fused pallas_call over the batch.  Returns the context [T, B, D]."""
    B, T, F = inp.shape
    Tp = past_inp.shape[1]

    # additive key-padding bias (hoisted out of the kernel's head loop)
    attn_bias = jnp.where(past_inp[:, :, 0] == PAD, -1e9, 0.0
                          ).astype(jnp.float32)[:, None, :]              # [B, 1, Tp]

    kernel = functools.partial(_discourse_kernel, n_heads=N_HEADS,
                               head_pad=HEAD_PAD, d_real=MODEL_SIZE)
    full = lambda b: (0, 0)

    out_flat = pl.pallas_call(
        kernel,
        grid=(B,),
        in_specs=[
            pl.BlockSpec((None, T, F), lambda b: (b, 0, 0)),     # current input
            pl.BlockSpec((None, Tp, F), lambda b: (b, 0, 0)),    # past input
            pl.BlockSpec((None, 1, Tp), lambda b: (b, 0, 0)),    # key-pad bias
            pl.BlockSpec((8, DP), full),                         # packed LN params
            pl.BlockSpec((F, DP), full), pl.BlockSpec((1, DP), full),      # encoder
            pl.BlockSpec((DP, HB), full), pl.BlockSpec((1, HB), full),     # Q
            pl.BlockSpec((DP, 2 * HB), full), pl.BlockSpec((1, 2 * HB), full),  # KV
            pl.BlockSpec((HB, DP), full), pl.BlockSpec((1, DP), full),     # out proj
            pl.BlockSpec((DP, DP), full), pl.BlockSpec((DP, DP), full),    # gate (split)
            pl.BlockSpec((1, DP), full),
            pl.BlockSpec((DP, FFN_INNER), full), pl.BlockSpec((1, FFN_INNER), full),
            pl.BlockSpec((FFN_INNER, DP), full), pl.BlockSpec((1, DP), full),
        ],
        out_specs=pl.BlockSpec((T, DP), lambda b: (0, b)),       # time-major, lane-dense
        out_shape=jax.ShapeDtypeStruct((T, B * DP), jnp.float32),
        compiler_params=pltpu.CompilerParams(
            dimension_semantics=("parallel",)),
    )(inp, past_inp, attn_bias, params["ln_pack"],
      params["emb_w"], params["emb_b"],
      params["wq"], params["bq"], params["wkv"], params["bkv"],
      params["wo"], params["bo"],
      params["wg_cur"], params["wg_attn"], params["bg"],
      params["wf1"], params["bf1"], params["wf2"], params["bf2"])

    # free reshape to [T, B, DP], then strip the lane padding (tiny slice)
    return out_flat.reshape(T, B, DP)[:, :, :MODEL_SIZE]


def sinusoid_pos_emb(length, dim):
    pos = jnp.arange(length, dtype=jnp.float32)[:, None]
    div = jnp.exp(jnp.arange(0, dim, 2, dtype=jnp.float32)
                  * (-math.log(10000.0) / dim))
    pe = jnp.zeros((length, dim), dtype=jnp.float32)
    pe = pe.at[:, 0::2].set(jnp.sin(pos * div))
    pe = pe.at[:, 1::2].set(jnp.cos(pos * div))
    return pe[:, None, :]                                # [T, 1, D]


def init_params(key, feat_dim):
    """Weights stored pre-padded to the 128-lane width (head-blocked Q/K/V)."""
    D, I, H, HD = MODEL_SIZE, FFN_INNER, N_HEADS, HEAD_DIM
    f32, bf16 = jnp.float32, jnp.bfloat16
    keys = jax.random.split(key, 9)
    s = 0.02

    def rnd(k, shape):
        return s * jax.random.normal(k, shape, f32)

    def pad2(w, rows, cols):
        return jnp.zeros((rows, cols), f32).at[:w.shape[0], :w.shape[1]].set(w)

    # stand-in encoder: embedding linear (cols padded to DP)
    emb_w = pad2(rnd(keys[0], (feat_dim, D)), feat_dim, DP).astype(bf16)
    emb_b = jnp.zeros((1, DP), f32)

    # LayerNorm params packed: (enc_g, enc_b, attn_g, attn_b, ffn_g, ffn_b,
    # post_g, post_b).  gamma = 1 on the real lanes, 0 on padded lanes.
    g = jnp.zeros((DP,), f32).at[:D].set(1.0)
    z = jnp.zeros((DP,), f32)
    ln_pack = jnp.stack([g, z, g, z, g, z, g, z])                        # [8, DP]

    # attention projections, head-blocked: head h occupies lanes
    # [h*HEAD_PAD, h*HEAD_PAD + HD) of the padded Q/K/V width HB.
    wq_r = rnd(keys[1], (D, D))
    wk_r = rnd(keys[2], (D, D))
    wv_r = rnd(keys[3], (D, D))
    wo_r = rnd(keys[4], (D, D))
    wq = jnp.zeros((DP, HB), f32)
    wkv = jnp.zeros((DP, 2 * HB), f32)
    wo = jnp.zeros((HB, DP), f32)
    for h in range(H):
        c0, r0 = h * HEAD_PAD, h * HD
        wq = wq.at[:D, c0:c0 + HD].set(wq_r[:, r0:r0 + HD])
        wkv = wkv.at[:D, c0:c0 + HD].set(wk_r[:, r0:r0 + HD])
        wkv = wkv.at[:D, HB + c0:HB + c0 + HD].set(wv_r[:, r0:r0 + HD])
        wo = wo.at[c0:c0 + HD, :D].set(wo_r[r0:r0 + HD, :])

    # sigmoid gate over [current ; attended-past] -> split into two [D, D]
    wg_r = rnd(keys[5], (2 * D, D))
    wg_cur = pad2(wg_r[:D], DP, DP)
    wg_attn = pad2(wg_r[D:], DP, DP)

    # feed-forward (inner dim is already 128 = lane-dense)
    wf1 = pad2(rnd(keys[6], (D, I)), DP, I)
    wf2 = pad2(rnd(keys[7], (I, D)), I, DP)

    return {
        "emb_w": emb_w, "emb_b": emb_b,
        "ln_pack": ln_pack,
        "wq": wq.astype(bf16), "bq": jnp.zeros((1, HB), f32),
        "wkv": wkv.astype(bf16), "bkv": jnp.zeros((1, 2 * HB), f32),
        "wo": wo.astype(bf16), "bo": jnp.zeros((1, DP), f32),
        "wg_cur": wg_cur.astype(bf16), "wg_attn": wg_attn.astype(bf16),
        "bg": jnp.zeros((1, DP), f32),
        "wf1": wf1.astype(bf16), "bf1": jnp.zeros((1, I), f32),
        "wf2": wf2.astype(bf16), "bf2": jnp.zeros((1, DP), f32),
    }


def discourse_transformer_encoder_forward(params, inp, past_inp):
    """Mirrors DiscourseTransformerEncoder.forward(input, past_input)."""
    assert past_inp is not None
    B, T, _ = inp.shape

    # masks, as the PyTorch code builds them from feature-0 == PAD
    src_ids = inp[:, :, 0]                       # input.narrow(2,0,1).squeeze(2)
    dec_attn_mask = (src_ids == PAD)[:, None, :]                        # [B, 1, T]
    # TODO(synk): mask_src (query-side padding mask, [1, T, B]) is not applied
    # inside the fused gate layer.

    # one fused kernel: encoder stand-in + gate layer + postprocess LN,
    # emitted time-major [T, B, D]
    context = discourse_forward_fused(params, inp, past_inp)

    pos_emb = sinusoid_pos_emb(T, MODEL_SIZE)

    return {
        "context": context,
        "src_mask": dec_attn_mask,
        "src": inp,
        "pos_emb": pos_emb,
    }


# ----------------------------------------------------------------------------
if __name__ == "__main__":
    B, T, Tp, F = 2, 8, 8, 4
    key = jax.random.PRNGKey(0)
    k_in, k_past, k_par = jax.random.split(key, 3)

    inp = jax.random.normal(k_in, (B, T, F), jnp.float32)
    past_inp = jax.random.normal(k_past, (B, Tp, F), jnp.float32)
    # mark some positions as PAD via the feature-0 channel (never a full row)
    inp = inp.at[1, 6:, 0].set(PAD)
    past_inp = past_inp.at[0, 7:, 0].set(PAD)
    past_inp = past_inp.at[1, 5:, 0].set(PAD)

    params = init_params(k_par, F)

    fwd = jax.jit(discourse_transformer_encoder_forward)
    out = fwd(params, inp, past_inp)
    ctx = jax.block_until_ready(out["context"])

    assert ctx.shape == (T, B, MODEL_SIZE)
    assert out["src_mask"].shape == (B, 1, T)
    assert bool(jnp.all(jnp.isfinite(ctx)))
    print("KERNEL_OK")
</pallas_src>

<mosaic_0001>
module attributes {stable_mosaic.version = 11 : i64} {
  func.func @_discourse_kernel(%arg0: i32, %arg1: memref<1x8x4xf32, #tpu.memory_space<vmem>>, %arg2: memref<1x8x4xf32, #tpu.memory_space<vmem>>, %arg3: memref<1x1x8xf32, #tpu.memory_space<vmem>>, %arg4: memref<8x128xf32, #tpu.memory_space<vmem>>, %arg5: memref<4x128xbf16, #tpu.memory_space<vmem>>, %arg6: memref<1x128xf32, #tpu.memory_space<vmem>>, %arg7: memref<128x512xbf16, #tpu.memory_space<vmem>>, %arg8: memref<1x512xf32, #tpu.memory_space<vmem>>, %arg9: memref<128x1024xbf16, #tpu.memory_space<vmem>>, %arg10: memref<1x1024xf32, #tpu.memory_space<vmem>>, %arg11: memref<512x128xbf16, #tpu.memory_space<vmem>>, %arg12: memref<1x128xf32, #tpu.memory_space<vmem>>, %arg13: memref<128x128xbf16, #tpu.memory_space<vmem>>, %arg14: memref<128x128xbf16, #tpu.memory_space<vmem>>, %arg15: memref<1x128xf32, #tpu.memory_space<vmem>>, %arg16: memref<128x128xbf16, #tpu.memory_space<vmem>>, %arg17: memref<1x128xf32, #tpu.memory_space<vmem>>, %arg18: memref<128x128xbf16, #tpu.memory_space<vmem>>, %arg19: memref<1x128xf32, #tpu.memory_space<vmem>>, %arg20: memref<8x128xf32, #tpu.memory_space<vmem>>) attributes {dimension_semantics = [#tpu.dimension_semantics<parallel>], iteration_bounds = array<i64: 2>, scalar_prefetch = 0 : i64, scratch_operands = 0 : i64, tpu.core_type = #tpu.core_type<tc>, window_params = [{transform_indices = @transform_0, window_bounds = array<i64: 1, 8, 4>}, {transform_indices = @transform_1, window_bounds = array<i64: 1, 8, 4>}, {transform_indices = @transform_2, window_bounds = array<i64: 1, 1, 8>}, {pipeline_mode = #tpu.pipeline_mode<synchronous>, transform_indices = @transform_3, window_bounds = array<i64: 8, 128>}, {pipeline_mode = #tpu.pipeline_mode<synchronous>, transform_indices = @transform_4, window_bounds = array<i64: 4, 128>}, {pipeline_mode = #tpu.pipeline_mode<synchronous>, transform_indices = @transform_5, window_bounds = array<i64: 1, 128>}, {pipeline_mode = #tpu.pipeline_mode<synchronous>, transform_indices = @transform_6, window_bounds = array<i64: 128, 512>}, {pipeline_mode = #tpu.pipeline_mode<synchronous>, transform_indices = @transform_7, window_bounds = array<i64: 1, 512>}, {pipeline_mode = #tpu.pipeline_mode<synchronous>, transform_indices = @transform_8, window_bounds = array<i64: 128, 1024>}, {pipeline_mode = #tpu.pipeline_mode<synchronous>, transform_indices = @transform_9, window_bounds = array<i64: 1, 1024>}, {pipeline_mode = #tpu.pipeline_mode<synchronous>, transform_indices = @transform_10, window_bounds = array<i64: 512, 128>}, {pipeline_mode = #tpu.pipeline_mode<synchronous>, transform_indices = @transform_11, window_bounds = array<i64: 1, 128>}, {pipeline_mode = #tpu.pipeline_mode<synchronous>, transform_indices = @transform_12, window_bounds = array<i64: 128, 128>}, {pipeline_mode = #tpu.pipeline_mode<synchronous>, transform_indices = @transform_13, window_bounds = array<i64: 128, 128>}, {pipeline_mode = #tpu.pipeline_mode<synchronous>, transform_indices = @transform_14, window_bounds = array<i64: 1, 128>}, {pipeline_mode = #tpu.pipeline_mode<synchronous>, transform_indices = @transform_15, window_bounds = array<i64: 128, 128>}, {pipeline_mode = #tpu.pipeline_mode<synchronous>, transform_indices = @transform_16, window_bounds = array<i64: 1, 128>}, {pipeline_mode = #tpu.pipeline_mode<synchronous>, transform_indices = @transform_17, window_bounds = array<i64: 128, 128>}, {pipeline_mode = #tpu.pipeline_mode<synchronous>, transform_indices = @transform_18, window_bounds = array<i64: 1, 128>}, {transform_indices = @transform_19, window_bounds = array<i64: 8, 128>}]} {
    %c0 = arith.constant 0 : index
    %c0_0 = arith.constant 0 : index
    %0 = vector.load %arg4[%c0, %c0_0] : memref<8x128xf32, #tpu.memory_space<vmem>>, vector<8x128xf32>
    %c0_1 = arith.constant 0 : index
    %c0_2 = arith.constant 0 : index
    %c0_3 = arith.constant 0 : index
    %1 = vector.load %arg1[%c0_1, %c0_2, %c0_3] : memref<1x8x4xf32, #tpu.memory_space<vmem>>, vector<1x8x4xf32>
    %2 = vector.shape_cast %1 : vector<1x8x4xf32> to vector<8x4xf32>
    %3 = arith.truncf %2 : vector<8x4xf32> to vector<8x4xbf16>
    %c0_4 = arith.constant 0 : index
    %c0_5 = arith.constant 0 : index
    %4 = vector.load %arg5[%c0_4, %c0_5] : memref<4x128xbf16, #tpu.memory_space<vmem>>, vector<4x128xbf16>
    %cst = arith.constant dense<0.000000e+00> : vector<8x128xf32>
    %5 = tpu.matmul %3, %4, %cst {dimension_numbers = #tpu.dot_dimension_numbers<[1], [0], [0], [1], [0, 0, 1, 1], [], []>} : vector<8x4xbf16>, vector<4x128xbf16>, vector<8x128xf32> -> vector<8x128xf32>
    %c0_6 = arith.constant 0 : index
    %c0_7 = arith.constant 0 : index
    %6 = vector.load %arg6[%c0_6, %c0_7] : memref<1x128xf32, #tpu.memory_space<vmem>>, vector<1x128xf32>
    %7 = vector.broadcast %6 : vector<1x128xf32> to vector<8x128xf32>
    %8 = arith.addf %5, %7 : vector<8x128xf32>
    %9 = vector.extract_strided_slice %0 {offsets = [0, 0], sizes = [1, 128], strides = [1, 1]} : vector<8x128xf32> to vector<1x128xf32>
    %10 = vector.extract_strided_slice %0 {offsets = [1, 0], sizes = [1, 128], strides = [1, 1]} : vector<8x128xf32> to vector<1x128xf32>
    %cst_8 = arith.constant dense<0.000000e+00> : vector<8xf32>
    %11 = vector.multi_reduction <add>, %8, %cst_8 [1] : vector<8x128xf32> to vector<8xf32>
    %12 = vector.shape_cast %11 : vector<8xf32> to vector<8x1xf32>
    %cst_9 = arith.constant 3.125000e-02 : f32
    %13 = vector.broadcast %cst_9 : f32 to vector<8x1xf32>
    %14 = arith.mulf %12, %13 : vector<8x1xf32>
    %15 = arith.mulf %8, %8 : vector<8x128xf32>
    %cst_10 = arith.constant dense<0.000000e+00> : vector<8xf32>
    %16 = vector.multi_reduction <add>, %15, %cst_10 [1] : vector<8x128xf32> to vector<8xf32>
    %17 = vector.shape_cast %16 : vector<8xf32> to vector<8x1xf32>
    %cst_11 = arith.constant 3.125000e-02 : f32
    %18 = vector.broadcast %cst_11 : f32 to vector<8x1xf32>
    %19 = arith.mulf %17, %18 : vector<8x1xf32>
    %20 = arith.mulf %14, %14 : vector<8x1xf32>
    %21 = arith.subf %19, %20 : vector<8x1xf32>
    %cst_12 = arith.constant 0.000000e+00 : f32
    %22 = vector.broadcast %cst_12 : f32 to vector<8x1xf32>
    %23 = arith.maximumf %21, %22 : vector<8x1xf32>
    %24 = vector.broadcast %14 : vector<8x1xf32> to vector<8x128xf32>
    %25 = arith.subf %8, %24 : vector<8x128xf32>
    %cst_13 = arith.constant 9.99999974E-6 : f32
    %26 = vector.broadcast %cst_13 : f32 to vector<8x1xf32>
    %27 = arith.addf %23, %26 : vector<8x1xf32>
    %28 = math.rsqrt %27 : vector<8x1xf32>
    %29 = vector.broadcast %28 : vector<8x1xf32> to vector<8x128xf32>
    %30 = arith.mulf %25, %29 : vector<8x128xf32>
    %31 = vector.broadcast %9 : vector<1x128xf32> to vector<8x128xf32>
    %32 = arith.mulf %30, %31 : vector<8x128xf32>
    %33 = vector.broadcast %10 : vector<1x128xf32> to vector<8x128xf32>
    %34 = arith.addf %32, %33 : vector<8x128xf32>
    %c0_14 = arith.constant 0 : index
    %c0_15 = arith.constant 0 : index
    %c0_16 = arith.constant 0 : index
    %35 = vector.load %arg2[%c0_14, %c0_15, %c0_16] : memref<1x8x4xf32, #tpu.memory_space<vmem>>, vector<1x8x4xf32>
    %36 = vector.shape_cast %35 : vector<1x8x4xf32> to vector<8x4xf32>
    %37 = arith.truncf %36 : vector<8x4xf32> to vector<8x4xbf16>
    %c0_17 = arith.constant 0 : index
    %c0_18 = arith.constant 0 : index
    %38 = vector.load %arg5[%c0_17, %c0_18] : memref<4x128xbf16, #tpu.memory_space<vmem>>, vector<4x128xbf16>
    %cst_19 = arith.constant dense<0.000000e+00> : vector<8x128xf32>
    %39 = tpu.matmul %37, %38, %cst_19 {dimension_numbers = #tpu.dot_dimension_numbers<[1], [0], [0], [1], [0, 0, 1, 1], [], []>} : vector<8x4xbf16>, vector<4x128xbf16>, vector<8x128xf32> -> vector<8x128xf32>
    %c0_20 = arith.constant 0 : index
    %c0_21 = arith.constant 0 : index
    %40 = vector.load %arg6[%c0_20, %c0_21] : memref<1x128xf32, #tpu.memory_space<vmem>>, vector<1x128xf32>
    %41 = vector.broadcast %40 : vector<1x128xf32> to vector<8x128xf32>
    %42 = arith.addf %39, %41 : vector<8x128xf32>
    %43 = vector.extract_strided_slice %0 {offsets = [0, 0], sizes = [1, 128], strides = [1, 1]} : vector<8x128xf32> to vector<1x128xf32>
    %44 = vector.extract_strided_slice %0 {offsets = [1, 0], sizes = [1, 128], strides = [1, 1]} : vector<8x128xf32> to vector<1x128xf32>
    %cst_22 = arith.constant dense<0.000000e+00> : vector<8xf32>
    %45 = vector.multi_reduction <add>, %42, %cst_22 [1] : vector<8x128xf32> to vector<8xf32>
    %46 = vector.shape_cast %45 : vector<8xf32> to vector<8x1xf32>
    %cst_23 = arith.constant 3.125000e-02 : f32
    %47 = vector.broadcast %cst_23 : f32 to vector<8x1xf32>
    %48 = arith.mulf %46, %47 : vector<8x1xf32>
    %49 = arith.mulf %42, %42 : vector<8x128xf32>
    %cst_24 = arith.constant dense<0.000000e+00> : vector<8xf32>
    %50 = vector.multi_reduction <add>, %49, %cst_24 [1] : vector<8x128xf32> to vector<8xf32>
    %51 = vector.shape_cast %50 : vector<8xf32> to vector<8x1xf32>
    %cst_25 = arith.constant 3.125000e-02 : f32
    %52 = vector.broadcast %cst_25 : f32 to vector<8x1xf32>
    %53 = arith.mulf %51, %52 : vector<8x1xf32>
    %54 = arith.mulf %48, %48 : vector<8x1xf32>
    %55 = arith.subf %53, %54 : vector<8x1xf32>
    %cst_26 = arith.constant 0.000000e+00 : f32
    %56 = vector.broadcast %cst_26 : f32 to vector<8x1xf32>
    %57 = arith.maximumf %55, %56 : vector<8x1xf32>
    %58 = vector.broadcast %48 : vector<8x1xf32> to vector<8x128xf32>
    %59 = arith.subf %42, %58 : vector<8x128xf32>
    %cst_27 = arith.constant 9.99999974E-6 : f32
    %60 = vector.broadcast %cst_27 : f32 to vector<8x1xf32>
    %61 = arith.addf %57, %60 : vector<8x1xf32>
    %62 = math.rsqrt %61 : vector<8x1xf32>
    %63 = vector.broadcast %62 : vector<8x1xf32> to vector<8x128xf32>
    %64 = arith.mulf %59, %63 : vector<8x128xf32>
    %65 = vector.broadcast %43 : vector<1x128xf32> to vector<8x128xf32>
    %66 = arith.mulf %64, %65 : vector<8x128xf32>
    %67 = vector.broadcast %44 : vector<1x128xf32> to vector<8x128xf32>
    %68 = arith.addf %66, %67 : vector<8x128xf32>
    %69 = vector.extract_strided_slice %0 {offsets = [2, 0], sizes = [1, 128], strides = [1, 1]} : vector<8x128xf32> to vector<1x128xf32>
    %70 = vector.extract_strided_slice %0 {offsets = [3, 0], sizes = [1, 128], strides = [1, 1]} : vector<8x128xf32> to vector<1x128xf32>
    %cst_28 = arith.constant dense<0.000000e+00> : vector<8xf32>
    %71 = vector.multi_reduction <add>, %34, %cst_28 [1] : vector<8x128xf32> to vector<8xf32>
    %72 = vector.shape_cast %71 : vector<8xf32> to vector<8x1xf32>
    %cst_29 = arith.constant 3.125000e-02 : f32
    %73 = vector.broadcast %cst_29 : f32 to vector<8x1xf32>
    %74 = arith.mulf %72, %73 : vector<8x1xf32>
    %75 = arith.mulf %34, %34 : vector<8x128xf32>
    %cst_30 = arith.constant dense<0.000000e+00> : vector<8xf32>
    %76 = vector.multi_reduction <add>, %75, %cst_30 [1] : vector<8x128xf32> to vector<8xf32>
    %77 = vector.shape_cast %76 : vector<8xf32> to vector<8x1xf32>
    %cst_31 = arith.constant 3.125000e-02 : f32
    %78 = vector.broadcast %cst_31 : f32 to vector<8x1xf32>
    %79 = arith.mulf %77, %78 : vector<8x1xf32>
    %80 = arith.mulf %74, %74 : vector<8x1xf32>
    %81 = arith.subf %79, %80 : vector<8x1xf32>
    %cst_32 = arith.constant 0.000000e+00 : f32
    %82 = vector.broadcast %cst_32 : f32 to vector<8x1xf32>
    %83 = arith.maximumf %81, %82 : vector<8x1xf32>
    %84 = vector.broadcast %74 : vector<8x1xf32> to vector<8x128xf32>
    %85 = arith.subf %34, %84 : vector<8x128xf32>
    %cst_33 = arith.constant 9.99999974E-6 : f32
    %86 = vector.broadcast %cst_33 : f32 to vector<8x1xf32>
    %87 = arith.addf %83, %86 : vector<8x1xf32>
    %88 = math.rsqrt %87 : vector<8x1xf32>
    %89 = vector.broadcast %88 : vector<8x1xf32> to vector<8x128xf32>
    %90 = arith.mulf %85, %89 : vector<8x128xf32>
    %91 = vector.broadcast %69 : vector<1x128xf32> to vector<8x128xf32>
    %92 = arith.mulf %90, %91 : vector<8x128xf32>
    %93 = vector.broadcast %70 : vector<1x128xf32> to vector<8x128xf32>
    %94 = arith.addf %92, %93 : vector<8x128xf32>
    %95 = arith.truncf %94 : vector<8x128xf32> to vector<8x128xbf16>
    %c0_34 = arith.constant 0 : index
    %c0_35 = arith.constant 0 : index
    %96 = vector.load %arg7[%c0_34, %c0_35] : memref<128x512xbf16, #tpu.memory_space<vmem>>, vector<128x512xbf16>
    %cst_36 = arith.constant dense<0.000000e+00> : vector<8x512xf32>
    %97 = tpu.matmul %95, %96, %cst_36 {dimension_numbers = #tpu.dot_dimension_numbers<[1], [0], [0], [1], [0, 0, 1, 1], [], []>} : vector<8x128xbf16>, vector<128x512xbf16>, vector<8x512xf32> -> vector<8x512xf32>
    %c0_37 = arith.constant 0 : index
    %c0_38 = arith.constant 0 : index
    %98 = vector.load %arg8[%c0_37, %c0_38] : memref<1x512xf32, #tpu.memory_space<vmem>>, vector<1x512xf32>
    %99 = vector.broadcast %98 : vector<1x512xf32> to vector<8x512xf32>
    %100 = arith.addf %97, %99 : vector<8x512xf32>
    %cst_39 = arith.constant 0.353553385 : f32
    %101 = vector.broadcast %cst_39 : f32 to vector<8x512xf32>
    %102 = arith.mulf %100, %101 : vector<8x512xf32>
    %103 = arith.truncf %68 : vector<8x128xf32> to vector<8x128xbf16>
    %c0_40 = arith.constant 0 : index
    %c0_41 = arith.constant 0 : index
    %104 = vector.load %arg9[%c0_40, %c0_41] : memref<128x1024xbf16, #tpu.memory_space<vmem>>, vector<128x1024xbf16>
    %cst_42 = arith.constant dense<0.000000e+00> : vector<8x1024xf32>
    %105 = tpu.matmul %103, %104, %cst_42 {dimension_numbers = #tpu.dot_dimension_numbers<[1], [0], [0], [1], [0, 0, 1, 1], [], []>} : vector<8x128xbf16>, vector<128x1024xbf16>, vector<8x1024xf32> -> vector<8x1024xf32>
    %c0_43 = arith.constant 0 : index
    %c0_44 = arith.constant 0 : index
    %106 = vector.load %arg10[%c0_43, %c0_44] : memref<1x1024xf32, #tpu.memory_space<vmem>>, vector<1x1024xf32>
    %107 = vector.broadcast %106 : vector<1x1024xf32> to vector<8x1024xf32>
    %108 = arith.addf %105, %107 : vector<8x1024xf32>
    %109 = arith.truncf %102 : vector<8x512xf32> to vector<8x512xbf16>
    %110 = vector.extract_strided_slice %108 {offsets = [0, 0], sizes = [8, 512], strides = [1, 1]} : vector<8x1024xf32> to vector<8x512xf32>
    %111 = arith.truncf %110 : vector<8x512xf32> to vector<8x512xbf16>
    %112 = vector.extract_strided_slice %108 {offsets = [0, 512], sizes = [8, 512], strides = [1, 1]} : vector<8x1024xf32> to vector<8x512xf32>
    %113 = arith.truncf %112 : vector<8x512xf32> to vector<8x512xbf16>
    %c0_45 = arith.constant 0 : index
    %c0_46 = arith.constant 0 : index
    %c0_47 = arith.constant 0 : index
    %114 = vector.load %arg3[%c0_45, %c0_46, %c0_47] : memref<1x1x8xf32, #tpu.memory_space<vmem>>, vector<1x1x8xf32>
    %115 = vector.shape_cast %114 : vector<1x1x8xf32> to vector<1x8xf32>
    %116 = vector.extract_strided_slice %109 {offsets = [0, 0], sizes = [8, 128], strides = [1, 1]} : vector<8x512xbf16> to vector<8x128xbf16>
    %117 = vector.extract_strided_slice %111 {offsets = [0, 0], sizes = [8, 128], strides = [1, 1]} : vector<8x512xbf16> to vector<8x128xbf16>
    %cst_48 = arith.constant dense<0.000000e+00> : vector<8x8xf32>
    %118 = tpu.matmul %116, %117, %cst_48 {dimension_numbers = #tpu.dot_dimension_numbers<[1], [1], [0], [0], [0, 0, 1, 0], [], []>} : vector<8x128xbf16>, vector<8x128xbf16>, vector<8x8xf32> -> vector<8x8xf32>
    %119 = vector.broadcast %115 : vector<1x8xf32> to vector<8x8xf32>
    %120 = arith.addf %118, %119 : vector<8x8xf32>
    %cst_49 = arith.constant dense<0xFF800000> : vector<8xf32>
    %121 = vector.multi_reduction <maximumf>, %120, %cst_49 [1] : vector<8x8xf32> to vector<8xf32>
    %122 = vector.shape_cast %121 : vector<8xf32> to vector<8x1xf32>
    %123 = vector.broadcast %122 : vector<8x1xf32> to vector<8x8xf32>
    %124 = arith.subf %120, %123 : vector<8x8xf32>
    %125 = math.exp %124 : vector<8x8xf32>
    %cst_50 = arith.constant dense<0.000000e+00> : vector<8xf32>
    %126 = vector.multi_reduction <add>, %125, %cst_50 [1] : vector<8x8xf32> to vector<8xf32>
    %127 = vector.shape_cast %126 : vector<8xf32> to vector<8x1xf32>
    %128 = tpu.reciprocal %127 {approx = true} : vector<8x1xf32> -> vector<8x1xf32>
    %129 = vector.broadcast %128 : vector<8x1xf32> to vector<8x8xf32>
    %130 = arith.mulf %125, %129 : vector<8x8xf32>
    %131 = arith.truncf %130 : vector<8x8xf32> to vector<8x8xbf16>
    %132 = vector.extract_strided_slice %113 {offsets = [0, 0], sizes = [8, 128], strides = [1, 1]} : vector<8x512xbf16> to vector<8x128xbf16>
    %cst_51 = arith.constant dense<0.000000e+00> : vector<8x128xf32>
    %133 = tpu.matmul %131, %132, %cst_51 {dimension_numbers = #tpu.dot_dimension_numbers<[1], [0], [0], [1], [0, 0, 1, 1], [], []>} : vector<8x8xbf16>, vector<8x128xbf16>, vector<8x128xf32> -> vector<8x128xf32>
    %134 = vector.extract_strided_slice %109 {offsets = [0, 128], sizes = [8, 128], strides = [1, 1]} : vector<8x512xbf16> to vector<8x128xbf16>
    %135 = vector.extract_strided_slice %111 {offsets = [0, 128], sizes = [8, 128], strides = [1, 1]} : vector<8x512xbf16> to vector<8x128xbf16>
    %cst_52 = arith.constant dense<0.000000e+00> : vector<8x8xf32>
    %136 = tpu.matmul %134, %135, %cst_52 {dimension_numbers = #tpu.dot_dimension_numbers<[1], [1], [0], [0], [0, 0, 1, 0], [], []>} : vector<8x128xbf16>, vector<8x128xbf16>, vector<8x8xf32> -> vector<8x8xf32>
    %137 = vector.broadcast %115 : vector<1x8xf32> to vector<8x8xf32>
    %138 = arith.addf %136, %137 : vector<8x8xf32>
    %cst_53 = arith.constant dense<0xFF800000> : vector<8xf32>
    %139 = vector.multi_reduction <maximumf>, %138, %cst_53 [1] : vector<8x8xf32> to vector<8xf32>
    %140 = vector.shape_cast %139 : vector<8xf32> to vector<8x1xf32>
    %141 = vector.broadcast %140 : vector<8x1xf32> to vector<8x8xf32>
    %142 = arith.subf %138, %141 : vector<8x8xf32>
    %143 = math.exp %142 : vector<8x8xf32>
    %cst_54 = arith.constant dense<0.000000e+00> : vector<8xf32>
    %144 = vector.multi_reduction <add>, %143, %cst_54 [1] : vector<8x8xf32> to vector<8xf32>
    %145 = vector.shape_cast %144 : vector<8xf32> to vector<8x1xf32>
    %146 = tpu.reciprocal %145 {approx = true} : vector<8x1xf32> -> vector<8x1xf32>
    %147 = vector.broadcast %146 : vector<8x1xf32> to vector<8x8xf32>
    %148 = arith.mulf %143, %147 : vector<8x8xf32>
    %149 = arith.truncf %148 : vector<8x8xf32> to vector<8x8xbf16>
    %150 = vector.extract_strided_slice %113 {offsets = [0, 128], sizes = [8, 128], strides = [1, 1]} : vector<8x512xbf16> to vector<8x128xbf16>
    %cst_55 = arith.constant dense<0.000000e+00> : vector<8x128xf32>
    %151 = tpu.matmul %149, %150, %cst_55 {dimension_numbers = #tpu.dot_dimension_numbers<[1], [0], [0], [1], [0, 0, 1, 1], [], []>} : vector<8x8xbf16>, vector<8x128xbf16>, vector<8x128xf32> -> vector<8x128xf32>
    %152 = vector.extract_strided_slice %109 {offsets = [0, 256], sizes = [8, 128], strides = [1, 1]} : vector<8x512xbf16> to vector<8x128xbf16>
    %153 = vector.extract_strided_slice %111 {offsets = [0, 256], sizes = [8, 128], strides = [1, 1]} : vector<8x512xbf16> to vector<8x128xbf16>
    %cst_56 = arith.constant dense<0.000000e+00> : vector<8x8xf32>
    %154 = tpu.matmul %152, %153, %cst_56 {dimension_numbers = #tpu.dot_dimension_numbers<[1], [1], [0], [0], [0, 0, 1, 0], [], []>} : vector<8x128xbf16>, vector<8x128xbf16>, vector<8x8xf32> -> vector<8x8xf32>
    %155 = vector.broadcast %115 : vector<1x8xf32> to vector<8x8xf32>
    %156 = arith.addf %154, %155 : vector<8x8xf32>
    %cst_57 = arith.constant dense<0xFF800000> : vector<8xf32>
    %157 = vector.multi_reduction <maximumf>, %156, %cst_57 [1] : vector<8x8xf32> to vector<8xf32>
    %158 = vector.shape_cast %157 : vector<8xf32> to vector<8x1xf32>
    %159 = vector.broadcast %158 : vector<8x1xf32> to vector<8x8xf32>
    %160 = arith.subf %156, %159 : vector<8x8xf32>
    %161 = math.exp %160 : vector<8x8xf32>
    %cst_58 = arith.constant dense<0.000000e+00> : vector<8xf32>
    %162 = vector.multi_reduction <add>, %161, %cst_58 [1] : vector<8x8xf32> to vector<8xf32>
    %163 = vector.shape_cast %162 : vector<8xf32> to vector<8x1xf32>
    %164 = tpu.reciprocal %163 {approx = true} : vector<8x1xf32> -> vector<8x1xf32>
    %165 = vector.broadcast %164 : vector<8x1xf32> to vector<8x8xf32>
    %166 = arith.mulf %161, %165 : vector<8x8xf32>
    %167 = arith.truncf %166 : vector<8x8xf32> to vector<8x8xbf16>
    %168 = vector.extract_strided_slice %113 {offsets = [0, 256], sizes = [8, 128], strides = [1, 1]} : vector<8x512xbf16> to vector<8x128xbf16>
    %cst_59 = arith.constant dense<0.000000e+00> : vector<8x128xf32>
    %169 = tpu.matmul %167, %168, %cst_59 {dimension_numbers = #tpu.dot_dimension_numbers<[1], [0], [0], [1], [0, 0, 1, 1], [], []>} : vector<8x8xbf16>, vector<8x128xbf16>, vector<8x128xf32> -> vector<8x128xf32>
    %170 = vector.extract_strided_slice %109 {offsets = [0, 384], sizes = [8, 128], strides = [1, 1]} : vector<8x512xbf16> to vector<8x128xbf16>
    %171 = vector.extract_strided_slice %111 {offsets = [0, 384], sizes = [8, 128], strides = [1, 1]} : vector<8x512xbf16> to vector<8x128xbf16>
    %cst_60 = arith.constant dense<0.000000e+00> : vector<8x8xf32>
    %172 = tpu.matmul %170, %171, %cst_60 {dimension_numbers = #tpu.dot_dimension_numbers<[1], [1], [0], [0], [0, 0, 1, 0], [], []>} : vector<8x128xbf16>, vector<8x128xbf16>, vector<8x8xf32> -> vector<8x8xf32>
    %173 = vector.broadcast %115 : vector<1x8xf32> to vector<8x8xf32>
    %174 = arith.addf %172, %173 : vector<8x8xf32>
    %cst_61 = arith.constant dense<0xFF800000> : vector<8xf32>
    %175 = vector.multi_reduction <maximumf>, %174, %cst_61 [1] : vector<8x8xf32> to vector<8xf32>
    %176 = vector.shape_cast %175 : vector<8xf32> to vector<8x1xf32>
    %177 = vector.broadcast %176 : vector<8x1xf32> to vector<8x8xf32>
    %178 = arith.subf %174, %177 : vector<8x8xf32>
    %179 = math.exp %178 : vector<8x8xf32>
    %cst_62 = arith.constant dense<0.000000e+00> : vector<8xf32>
    %180 = vector.multi_reduction <add>, %179, %cst_62 [1] : vector<8x8xf32> to vector<8xf32>
    %181 = vector.shape_cast %180 : vector<8xf32> to vector<8x1xf32>
    %182 = tpu.reciprocal %181 {approx = true} : vector<8x1xf32> -> vector<8x1xf32>
    %183 = vector.broadcast %182 : vector<8x1xf32> to vector<8x8xf32>
    %184 = arith.mulf %179, %183 : vector<8x8xf32>
    %185 = arith.truncf %184 : vector<8x8xf32> to vector<8x8xbf16>
    %186 = vector.extract_strided_slice %113 {offsets = [0, 384], sizes = [8, 128], strides = [1, 1]} : vector<8x512xbf16> to vector<8x128xbf16>
    %cst_63 = arith.constant dense<0.000000e+00> : vector<8x128xf32>
    %187 = tpu.matmul %185, %186, %cst_63 {dimension_numbers = #tpu.dot_dimension_numbers<[1], [0], [0], [1], [0, 0, 1, 1], [], []>} : vector<8x8xbf16>, vector<8x128xbf16>, vector<8x128xf32> -> vector<8x128xf32>
    %188 = tpu.concatenate %133, %151, %169, %187 in 1 : vector<8x128xf32>, vector<8x128xf32>, vector<8x128xf32>, vector<8x128xf32> -> vector<8x512xf32>
    %189 = arith.truncf %188 : vector<8x512xf32> to vector<8x512xbf16>
    %c0_64 = arith.constant 0 : index
    %c0_65 = arith.constant 0 : index
    %190 = vector.load %arg11[%c0_64, %c0_65] : memref<512x128xbf16, #tpu.memory_space<vmem>>, vector<512x128xbf16>
    %cst_66 = arith.constant dense<0.000000e+00> : vector<8x128xf32>
    %191 = tpu.matmul %189, %190, %cst_66 {dimension_numbers = #tpu.dot_dimension_numbers<[1], [0], [0], [1], [0, 0, 1, 1], [], []>} : vector<8x512xbf16>, vector<512x128xbf16>, vector<8x128xf32> -> vector<8x128xf32>
    %c0_67 = arith.constant 0 : index
    %c0_68 = arith.constant 0 : index
    %192 = vector.load %arg12[%c0_67, %c0_68] : memref<1x128xf32, #tpu.memory_space<vmem>>, vector<1x128xf32>
    %193 = vector.broadcast %192 : vector<1x128xf32> to vector<8x128xf32>
    %194 = arith.addf %191, %193 : vector<8x128xf32>
    %195 = arith.truncf %34 : vector<8x128xf32> to vector<8x128xbf16>
    %c0_69 = arith.constant 0 : index
    %c0_70 = arith.constant 0 : index
    %196 = vector.load %arg13[%c0_69, %c0_70] : memref<128x128xbf16, #tpu.memory_space<vmem>>, vector<128x128xbf16>
    %cst_71 = arith.constant dense<0.000000e+00> : vector<8x128xf32>
    %197 = tpu.matmul %195, %196, %cst_71 {dimension_numbers = #tpu.dot_dimension_numbers<[1], [0], [0], [1], [0, 0, 1, 1], [], []>} : vector<8x128xbf16>, vector<128x128xbf16>, vector<8x128xf32> -> vector<8x128xf32>
    %198 = arith.truncf %194 : vector<8x128xf32> to vector<8x128xbf16>
    %c0_72 = arith.constant 0 : index
    %c0_73 = arith.constant 0 : index
    %199 = vector.load %arg14[%c0_72, %c0_73] : memref<128x128xbf16, #tpu.memory_space<vmem>>, vector<128x128xbf16>
    %cst_74 = arith.constant dense<0.000000e+00> : vector<8x128xf32>
    %200 = tpu.matmul %198, %199, %cst_74 {dimension_numbers = #tpu.dot_dimension_numbers<[1], [0], [0], [1], [0, 0, 1, 1], [], []>} : vector<8x128xbf16>, vector<128x128xbf16>, vector<8x128xf32> -> vector<8x128xf32>
    %201 = arith.addf %197, %200 : vector<8x128xf32>
    %c0_75 = arith.constant 0 : index
    %c0_76 = arith.constant 0 : index
    %202 = vector.load %arg15[%c0_75, %c0_76] : memref<1x128xf32, #tpu.memory_space<vmem>>, vector<1x128xf32>
    %203 = vector.broadcast %202 : vector<1x128xf32> to vector<8x128xf32>
    %204 = arith.addf %201, %203 : vector<8x128xf32>
    %205 = arith.negf %204 : vector<8x128xf32>
    %206 = math.exp %205 : vector<8x128xf32>
    %cst_77 = arith.constant 1.000000e+00 : f32
    %207 = vector.broadcast %cst_77 : f32 to vector<8x128xf32>
    %208 = arith.addf %207, %206 : vector<8x128xf32>
    %209 = arith.divf %207, %208 : vector<8x128xf32>
    %210 = arith.mulf %209, %34 : vector<8x128xf32>
    %cst_78 = arith.constant 1.000000e+00 : f32
    %211 = vector.broadcast %cst_78 : f32 to vector<8x128xf32>
    %212 = arith.subf %211, %209 : vector<8x128xf32>
    %213 = arith.mulf %212, %194 : vector<8x128xf32>
    %214 = arith.addf %210, %213 : vector<8x128xf32>
    %215 = vector.extract_strided_slice %0 {offsets = [4, 0], sizes = [1, 128], strides = [1, 1]} : vector<8x128xf32> to vector<1x128xf32>
    %216 = vector.extract_strided_slice %0 {offsets = [5, 0], sizes = [1, 128], strides = [1, 1]} : vector<8x128xf32> to vector<1x128xf32>
    %cst_79 = arith.constant dense<0.000000e+00> : vector<8xf32>
    %217 = vector.multi_reduction <add>, %214, %cst_79 [1] : vector<8x128xf32> to vector<8xf32>
    %218 = vector.shape_cast %217 : vector<8xf32> to vector<8x1xf32>
    %cst_80 = arith.constant 3.125000e-02 : f32
    %219 = vector.broadcast %cst_80 : f32 to vector<8x1xf32>
    %220 = arith.mulf %218, %219 : vector<8x1xf32>
    %221 = arith.mulf %214, %214 : vector<8x128xf32>
    %cst_81 = arith.constant dense<0.000000e+00> : vector<8xf32>
    %222 = vector.multi_reduction <add>, %221, %cst_81 [1] : vector<8x128xf32> to vector<8xf32>
    %223 = vector.shape_cast %222 : vector<8xf32> to vector<8x1xf32>
    %cst_82 = arith.constant 3.125000e-02 : f32
    %224 = vector.broadcast %cst_82 : f32 to vector<8x1xf32>
    %225 = arith.mulf %223, %224 : vector<8x1xf32>
    %226 = arith.mulf %220, %220 : vector<8x1xf32>
    %227 = arith.subf %225, %226 : vector<8x1xf32>
    %cst_83 = arith.constant 0.000000e+00 : f32
    %228 = vector.broadcast %cst_83 : f32 to vector<8x1xf32>
    %229 = arith.maximumf %227, %228 : vector<8x1xf32>
    %230 = vector.broadcast %220 : vector<8x1xf32> to vector<8x128xf32>
    %231 = arith.subf %214, %230 : vector<8x128xf32>
    %cst_84 = arith.constant 9.99999974E-6 : f32
    %232 = vector.broadcast %cst_84 : f32 to vector<8x1xf32>
    %233 = arith.addf %229, %232 : vector<8x1xf32>
    %234 = math.rsqrt %233 : vector<8x1xf32>
    %235 = vector.broadcast %234 : vector<8x1xf32> to vector<8x128xf32>
    %236 = arith.mulf %231, %235 : vector<8x128xf32>
    %237 = vector.broadcast %215 : vector<1x128xf32> to vector<8x128xf32>
    %238 = arith.mulf %236, %237 : vector<8x128xf32>
    %239 = vector.broadcast %216 : vector<1x128xf32> to vector<8x128xf32>
    %240 = arith.addf %238, %239 : vector<8x128xf32>
    %241 = arith.truncf %240 : vector<8x128xf32> to vector<8x128xbf16>
    %c0_85 = arith.constant 0 : index
    %c0_86 = arith.constant 0 : index
    %242 = vector.load %arg16[%c0_85, %c0_86] : memref<128x128xbf16, #tpu.memory_space<vmem>>, vector<128x128xbf16>
    %cst_87 = arith.constant dense<0.000000e+00> : vector<8x128xf32>
    %243 = tpu.matmul %241, %242, %cst_87 {dimension_numbers = #tpu.dot_dimension_numbers<[1], [0], [0], [1], [0, 0, 1, 1], [], []>} : vector<8x128xbf16>, vector<128x128xbf16>, vector<8x128xf32> -> vector<8x128xf32>
    %c0_88 = arith.constant 0 : index
    %c0_89 = arith.constant 0 : index
    %244 = vector.load %arg17[%c0_88, %c0_89] : memref<1x128xf32, #tpu.memory_space<vmem>>, vector<1x128xf32>
    %245 = vector.broadcast %244 : vector<1x128xf32> to vector<8x128xf32>
    %246 = arith.addf %243, %245 : vector<8x128xf32>
    %cst_90 = arith.constant 0.000000e+00 : f32
    %247 = vector.broadcast %cst_90 : f32 to vector<8x128xf32>
    %248 = arith.maximumf %246, %247 : vector<8x128xf32>
    %249 = arith.truncf %248 : vector<8x128xf32> to vector<8x128xbf16>
    %c0_91 = arith.constant 0 : index
    %c0_92 = arith.constant 0 : index
    %250 = vector.load %arg18[%c0_91, %c0_92] : memref<128x128xbf16, #tpu.memory_space<vmem>>, vector<128x128xbf16>
    %cst_93 = arith.constant dense<0.000000e+00> : vector<8x128xf32>
    %251 = tpu.matmul %249, %250, %cst_93 {dimension_numbers = #tpu.dot_dimension_numbers<[1], [0], [0], [1], [0, 0, 1, 1], [], []>} : vector<8x128xbf16>, vector<128x128xbf16>, vector<8x128xf32> -> vector<8x128xf32>
    %c0_94 = arith.constant 0 : index
    %c0_95 = arith.constant 0 : index
    %252 = vector.load %arg19[%c0_94, %c0_95] : memref<1x128xf32, #tpu.memory_space<vmem>>, vector<1x128xf32>
    %253 = vector.broadcast %252 : vector<1x128xf32> to vector<8x128xf32>
    %254 = arith.addf %251, %253 : vector<8x128xf32>
    %255 = arith.addf %214, %254 : vector<8x128xf32>
    %256 = vector.extract_strided_slice %0 {offsets = [6, 0], sizes = [1, 128], strides = [1, 1]} : vector<8x128xf32> to vector<1x128xf32>
    %257 = vector.extract_strided_slice %0 {offsets = [7, 0], sizes = [1, 128], strides = [1, 1]} : vector<8x128xf32> to vector<1x128xf32>
    %cst_96 = arith.constant dense<0.000000e+00> : vector<8xf32>
    %258 = vector.multi_reduction <add>, %255, %cst_96 [1] : vector<8x128xf32> to vector<8xf32>
    %259 = vector.shape_cast %258 : vector<8xf32> to vector<8x1xf32>
    %cst_97 = arith.constant 3.125000e-02 : f32
    %260 = vector.broadcast %cst_97 : f32 to vector<8x1xf32>
    %261 = arith.mulf %259, %260 : vector<8x1xf32>
    %262 = arith.mulf %255, %255 : vector<8x128xf32>
    %cst_98 = arith.constant dense<0.000000e+00> : vector<8xf32>
    %263 = vector.multi_reduction <add>, %262, %cst_98 [1] : vector<8x128xf32> to vector<8xf32>
    %264 = vector.shape_cast %263 : vector<8xf32> to vector<8x1xf32>
    %cst_99 = arith.constant 3.125000e-02 : f32
    %265 = vector.broadcast %cst_99 : f32 to vector<8x1xf32>
    %266 = arith.mulf %264, %265 : vector<8x1xf32>
    %267 = arith.mulf %261, %261 : vector<8x1xf32>
    %268 = arith.subf %266, %267 : vector<8x1xf32>
    %cst_100 = arith.constant 0.000000e+00 : f32
    %269 = vector.broadcast %cst_100 : f32 to vector<8x1xf32>
    %270 = arith.maximumf %268, %269 : vector<8x1xf32>
    %271 = vector.broadcast %261 : vector<8x1xf32> to vector<8x128xf32>
    %272 = arith.subf %255, %271 : vector<8x128xf32>
    %cst_101 = arith.constant 9.99999974E-6 : f32
    %273 = vector.broadcast %cst_101 : f32 to vector<8x1xf32>
    %274 = arith.addf %270, %273 : vector<8x1xf32>
    %275 = math.rsqrt %274 : vector<8x1xf32>
    %276 = vector.broadcast %275 : vector<8x1xf32> to vector<8x128xf32>
    %277 = arith.mulf %272, %276 : vector<8x128xf32>
    %278 = vector.broadcast %256 : vector<1x128xf32> to vector<8x128xf32>
    %279 = arith.mulf %277, %278 : vector<8x128xf32>
    %280 = vector.broadcast %257 : vector<1x128xf32> to vector<8x128xf32>
    %281 = arith.addf %279, %280 : vector<8x128xf32>
    %c0_102 = arith.constant 0 : index
    %c0_103 = arith.constant 0 : index
    %282 = vector.load %arg20[%c0_102, %c0_103] : memref<8x128xf32, #tpu.memory_space<vmem>>, vector<8x128xf32>
    tpu.vector_store %arg20[%c0_102, %c0_103], %281 {strides = array<i32>} : memref<8x128xf32, #tpu.memory_space<vmem>>, vector<8x128xf32>,
    return
  }
  func.func @transform_0(%arg0: i32) -> (i32, i32, i32) {
    %c0_i32 = arith.constant 0 : i32
    %c0_i32_0 = arith.constant 0 : i32
    %c0_i32_1 = arith.constant 0 : i32
    return %arg0, %c0_i32, %c0_i32_0 : i32, i32, i32
  }
  func.func @transform_1(%arg0: i32) -> (i32, i32, i32) {
    %c0_i32 = arith.constant 0 : i32
    %c0_i32_0 = arith.constant 0 : i32
    %c0_i32_1 = arith.constant 0 : i32
    return %arg0, %c0_i32, %c0_i32_0 : i32, i32, i32
  }
  func.func @transform_2(%arg0: i32) -> (i32, i32, i32) {
    %c0_i32 = arith.constant 0 : i32
    %c0_i32_0 = arith.constant 0 : i32
    %c0_i32_1 = arith.constant 0 : i32
    return %arg0, %c0_i32, %c0_i32_0 : i32, i32, i32
  }
  func.func @transform_3(%arg0: i32) -> (i32, i32) {
    %c0_i32 = arith.constant 0 : i32
    %c0_i32_0 = arith.constant 0 : i32
    %c0_i32_1 = arith.constant 0 : i32
    return %c0_i32, %c0_i32_0 : i32, i32
  }
  func.func @transform_4(%arg0: i32) -> (i32, i32) {
    %c0_i32 = arith.constant 0 : i32
    %c0_i32_0 = arith.constant 0 : i32
    %c0_i32_1 = arith.constant 0 : i32
    return %c0_i32, %c0_i32_0 : i32, i32
  }
  func.func @transform_5(%arg0: i32) -> (i32, i32) {
    %c0_i32 = arith.constant 0 : i32
    %c0_i32_0 = arith.constant 0 : i32
    %c0_i32_1 = arith.constant 0 : i32
    return %c0_i32, %c0_i32_0 : i32, i32
  }
  func.func @transform_6(%arg0: i32) -> (i32, i32) {
    %c0_i32 = arith.constant 0 : i32
    %c0_i32_0 = arith.constant 0 : i32
    %c0_i32_1 = arith.constant 0 : i32
    return %c0_i32, %c0_i32_0 : i32, i32
  }
  func.func @transform_7(%arg0: i32) -> (i32, i32) {
    %c0_i32 = arith.constant 0 : i32
    %c0_i32_0 = arith.constant 0 : i32
    %c0_i32_1 = arith.constant 0 : i32
    return %c0_i32, %c0_i32_0 : i32, i32
  }
  func.func @transform_8(%arg0: i32) -> (i32, i32) {
    %c0_i32 = arith.constant 0 : i32
    %c0_i32_0 = arith.constant 0 : i32
    %c0_i32_1 = arith.constant 0 : i32
    return %c0_i32, %c0_i32_0 : i32, i32
  }
  func.func @transform_9(%arg0: i32) -> (i32, i32) {
    %c0_i32 = arith.constant 0 : i32
    %c0_i32_0 = arith.constant 0 : i32
    %c0_i32_1 = arith.constant 0 : i32
    return %c0_i32, %c0_i32_0 : i32, i32
  }
  func.func @transform_10(%arg0: i32) -> (i32, i32) {
    %c0_i32 = arith.constant 0 : i32
    %c0_i32_0 = arith.constant 0 : i32
    %c0_i32_1 = arith.constant 0 : i32
    return %c0_i32, %c0_i32_0 : i32, i32
  }
  func.func @transform_11(%arg0: i32) -> (i32, i32) {
    %c0_i32 = arith.constant 0 : i32
    %c0_i32_0 = arith.constant 0 : i32
    %c0_i32_1 = arith.constant 0 : i32
    return %c0_i32, %c0_i32_0 : i32, i32
  }
  func.func @transform_12(%arg0: i32) -> (i32, i32) {
    %c0_i32 = arith.constant 0 : i32
    %c0_i32_0 = arith.constant 0 : i32
    %c0_i32_1 = arith.constant 0 : i32
    return %c0_i32, %c0_i32_0 : i32, i32
  }
  func.func @transform_13(%arg0: i32) -> (i32, i32) {
    %c0_i32 = arith.constant 0 : i32
    %c0_i32_0 = arith.constant 0 : i32
    %c0_i32_1 = arith.constant 0 : i32
    return %c0_i32, %c0_i32_0 : i32, i32
  }
  func.func @transform_14(%arg0: i32) -> (i32, i32) {
    %c0_i32 = arith.constant 0 : i32
    %c0_i32_0 = arith.constant 0 : i32
    %c0_i32_1 = arith.constant 0 : i32
    return %c0_i32, %c0_i32_0 : i32, i32
  }
  func.func @transform_15(%arg0: i32) -> (i32, i32) {
    %c0_i32 = arith.constant 0 : i32
    %c0_i32_0 = arith.constant 0 : i32
    %c0_i32_1 = arith.constant 0 : i32
    return %c0_i32, %c0_i32_0 : i32, i32
  }
  func.func @transform_16(%arg0: i32) -> (i32, i32) {
    %c0_i32 = arith.constant 0 : i32
    %c0_i32_0 = arith.constant 0 : i32
    %c0_i32_1 = arith.constant 0 : i32
    return %c0_i32, %c0_i32_0 : i32, i32
  }
  func.func @transform_17(%arg0: i32) -> (i32, i32) {
    %c0_i32 = arith.constant 0 : i32
    %c0_i32_0 = arith.constant 0 : i32
    %c0_i32_1 = arith.constant 0 : i32
    return %c0_i32, %c0_i32_0 : i32, i32
  }
  func.func @transform_18(%arg0: i32) -> (i32, i32) {
    %c0_i32 = arith.constant 0 : i32
    %c0_i32_0 = arith.constant 0 : i32
    %c0_i32_1 = arith.constant 0 : i32
    return %c0_i32, %c0_i32_0 : i32, i32
  }
  func.func @transform_19(%arg0: i32) -> (i32, i32) {
    %c0_i32 = arith.constant 0 : i32
    %c0_i32_0 = arith.constant 0 : i32
    return %c0_i32, %arg0 : i32, i32
  }
}

</mosaic_0001>

<bundles_post_ra>
// kernel: discourse_transformer_encoder_forward.1
= control target key start
LH: loop header
LB: loop body
LE: loop exit
PB: predicated region body
PF: predicated region fallthrough
CT: control target
= control target key end

     0   :  { %s4791_s0 = inlined_call_operand.vmem [shape: f32[2,8,4], index: 0, kind: input, shape index: {}]   ;;  %s4792_s1 = inlined_call_operand.vmem [shape: f32[2,8,4], index: 1, kind: input, shape index: {}]   ;;  %s4793_s2 = inlined_call_operand.vmem [shape: f32[2,1,8], index: 2, kind: input, shape index: {}]   ;;  %s4794_s3 = inlined_call_operand.hbm [shape: f32[8,128], index: 3, kind: input, shape index: {}]   ;;  %s4795_s4 = inlined_call_operand.hbm [shape: bf16[4,128], index: 4, kind: input, shape index: {}]   ;;  %s4796_s5 = inlined_call_operand.hbm [shape: f32[1,128], index: 5, kind: input, shape index: {}]   ;;  %s4797_s6 = inlined_call_operand.hbm [shape: bf16[128,512], index: 6, kind: input, shape index: {}]   ;;  %s4798_s7 = inlined_call_operand.hbm [shape: f32[1,512], index: 7, kind: input, shape index: {}]   ;;  %s4799_s8 = inlined_call_operand.hbm [shape: bf16[128,1024], index: 8, kind: input, shape index: {}]   ;;  %s4800_s9 = inlined_call_operand.vmem [shape: f32[1,1024], index: 9, kind: input, shape index: {}]   ;;  %s4801_s10 = inlined_call_operand.hbm [shape: bf16[512,128], index: 10, kind: input, shape index: {}]   ;;  %s4802_s11 = inlined_call_operand.vmem [shape: f32[1,128], index: 11, kind: input, shape index: {}]   ;;  %s4803_s12 = inlined_call_operand.vmem [shape: bf16[128,128], index: 12, kind: input, shape index: {}]   ;;  %s4804_s13 = inlined_call_operand.vmem [shape: bf16[128,128], index: 13, kind: input, shape index: {}]   ;;  %s4805_s14 = inlined_call_operand.vmem [shape: f32[1,128], index: 14, kind: input, shape index: {}]   ;;  %s4806_s15 = inlined_call_operand.vmem [shape: bf16[128,128], index: 15, kind: input, shape index: {}]   ;;  %s4807_s16 = inlined_call_operand.vmem [shape: f32[1,128], index: 16, kind: input, shape index: {}]   ;;  %s4808_s17 = inlined_call_operand.hbm [shape: bf16[128,128], index: 17, kind: input, shape index: {}]   ;;  %s4809_s18 = inlined_call_operand.vmem [shape: f32[1,128], index: 18, kind: input, shape index: {}]   ;;  %s4810_s19 = inlined_call_operand.vmem [shape: f32[8,256], index: 19, kind: output, shape index: {}]  }
   0x1   :  { %4815 = sst [smem:[#allocation21_spill]] %s4791_s0 }
   0x2   :  { %4816 = sst [smem:[#allocation22_spill]] %s4792_s1 }
   0x3   :  { %4817 = sst [smem:[#allocation23_spill]] %s4793_s2 }
   0x4   :  { %4818 = sst [smem:[#allocation24_spill]] %s4794_s3 }
   0x5   :  { %4819 = sst [smem:[#allocation25_spill]] %s4795_s4 }
   0x6   :  { %4820 = sst [smem:[#allocation26_spill]] %s4797_s6 }
   0x7   :  { %4821 = sst [smem:[#allocation27_spill]] %s4809_s18 }
   0x8   :  { %4822 = sst [smem:[#allocation28_spill]] %s4810_s19 }
   0x9   :  { %24 = vsyncpa [#allocation3], 0 }
   0xa   :  { %25 = vsyncpa [#allocation5], 0 }
   0xb   :  { %26 = vsyncpa [#allocation8], 0 }
   0xc   :  { %27 = vsyncpa [#allocation11], 0 }
   0xd   :  { %28 = vsyncpa [#allocation14], 0  ;;  %s4264_s0 = smov 0  }
   0xe LB: > { %4823 = sst [smem:[#allocation20_spill]] %s4145_s0  ;;  %s4147_s30 = smov [#allocation4]   ;;  %s4145_s0 = sphi %s4264_s0, %s34_s0  }
   0xf   : > { %s503_s20 = sshll.u32 %s4147_s30, 4  ;;  %s4270_s21 = sadd.s32 4294967295, %s4145_s0   ;;  %s504_s20 = int_to_ptr.vmem [resolvable:$true] %s503_s20 }
  0x10   : > { %p3217_p0 = scmp.ge.s32.totalorder %s4145_s0, 1  ;;  %p479_p1 = scmp.lt.s32.totalorder %s4145_s0, 3 }
  0x11   : > { %p4812_p2 = scmp.eq.s32.totalorder %s4270_s21, 0  ;;  %s4148_s22 = smov [#allocation7]  }
  0x12   : > { %p4275_p3 = pnand %p3217_p0, %p479_p1  ;;  %s524_s2 = sshll.u32 %s4148_s22, 4  ;;  %s4281_s2 = int_to_ptr.vmem [resolvable:$true] %s524_s2 }
  0x13   : > { %s4149_s24 = smov [#allocation10]   ;;  %s4826_s4 = sld [smem:[#allocation25_spill]] }
  0x14   : > { %s4824_s1 = scalar_select %p4275_p3, 1, 0 }
  0x15   : > { %p3686_p4 = pneg %p4275_p3  ;;  %s548_s25 = sshll.u32 %s4149_s24, 4  ;;  %s4289_s25 = int_to_ptr.vmem [resolvable:$true] %s548_s25 }
  0x17   : > { %p4285_p5 = pnand %p4812_p2, %p3686_p4 }
  0x19   : > { %s3895_s27 = scalar_lea.hbm %s4826_s4, 32  ;;  %p4299_p7 = pneg %p4285_p5 }
  0x1a   : > { %p3896_p6 = scmp.ne.s32.totalorder %s4826_s4, %s3895_s27  ;;  %p3902_p10 = scmp.lt.u32.totalorder %s3895_s27, %s4826_s4 }
  0x1c   : > { %p3898_p8 = pnand %p4299_p7, %p3896_p6 }
  0x1e   : > { %p3899_p9 = pneg %p3898_p8 }
  0x20   : > { %p3904_p11 = pnand %p3902_p10, %p3899_p9 }
  0x22   : > { %3907 = shalt.err (!%p3904_p11)
}
  0x23   : > { %s3908_s3 = scalar_lea.vmem %s504_s20, 32  ;;  %p3916_p1 = scmp.lt.s32.totalorder %s504_s20, %s504_s20 }
  0x24   : > { %p3909_p12 = scmp.ne.s32.totalorder %s504_s20, %s3908_s3  ;;  %p3917_p4 = scmp.lt.s32.totalorder %s3908_s3, %s3908_s3 }
  0x26   : > { %p3911_p13 = pnand %p3909_p12, %p4299_p7  ;;  %p3918_p2 = por %p3917_p4, %p3916_p1 }
  0x28   : > { %p3912_p0 = pneg %p3911_p13 }
  0x2a   : > { %p3919_p3 = pnand %p3918_p2, %p3912_p0 }
  0x2c   : > { %3922 = shalt.err (!%p3919_p3)
}
  0x2d   : > { %3692 = dma.hbm_to_vmem [thread:$0]  (!%p4285_p5), %s4826_s4, 32, %s504_s20, [#allocation5]  }
  0x2e   : > { %s4828_s6 = sld [smem:[#allocation26_spill]] }
  0x34   : > { %s3923_s22 = scalar_lea.hbm %s4828_s6, 4096 }
  0x35   : > { %p3924_p6 = scmp.ne.s32.totalorder %s4828_s6, %s3923_s22  ;;  %p3930_p2 = scmp.lt.u32.totalorder %s3923_s22, %s4828_s6 }
  0x37   : > { %p3926_p8 = pnand %p3924_p6, %p4299_p7 }
  0x39   : > { %p3927_p9 = pneg %p3926_p8 }
  0x3b   : > { %p3932_p3 = pnand %p3930_p2, %p3927_p9 }
  0x3d   : > { %3935 = shalt.err (!%p3932_p3)
}
  0x3e   : > { %s3936_s20 = scalar_lea.vmem %s4281_s2, 4096  ;;  %p3944_p13 = scmp.lt.s32.totalorder %s4281_s2, %s4281_s2 }
  0x3f   : > { %p3937_p10 = scmp.ne.s32.totalorder %s4281_s2, %s3936_s20  ;;  %p3945_p0 = scmp.lt.s32.totalorder %s3936_s20, %s3936_s20 }
  0x41   : > { %p3939_p11 = pnand %p3937_p10, %p4299_p7  ;;  %p3946_p1 = por %p3945_p0, %p3944_p13 }
  0x43   : > { %p3940_p12 = pneg %p3939_p11 }
  0x45   : > { %p3947_p4 = pnand %p3946_p1, %p3940_p12 }
  0x47   : > { %3950 = shalt.err (!%p3947_p4)
}
  0x48   : > { %s4150_s0 = smov 256   ;;  %s4151_s19 = smov 16  }
  0x49   : > { %3698 = dma.hbm_to_vmem [thread:$0]  (!%p4285_p5), %s4828_s6, 4096, %s4281_s2, [#allocation8], %s4150_s0, %s4150_s0, %s4151_s19  }
  0x4a   : > { %s3951_s22 = scalar_lea.hbm %s4799_s8, 8192 }
  0x4b   : > { %p3952_p6 = scmp.ne.s32.totalorder %s4799_s8, %s3951_s22  ;;  %p3958_p2 = scmp.lt.u32.totalorder %s3951_s22, %s4799_s8 }
  0x4d   : > { %p3954_p8 = pnand %p3952_p6, %p4299_p7 }
  0x4f   : > { %p3955_p9 = pneg %p3954_p8 }
  0x51   : > { %p3960_p3 = pnand %p3958_p2, %p3955_p9 }
  0x53   : > { %3963 = shalt.err (!%p3960_p3)
}
  0x54   : > { %s3964_s2 = scalar_lea.vmem %s4289_s25, 8192  ;;  %p3972_p13 = scmp.lt.s32.totalorder %s4289_s25, %s4289_s25 }
  0x55   : > { %p3965_p10 = scmp.ne.s32.totalorder %s4289_s25, %s3964_s2  ;;  %p3973_p0 = scmp.lt.s32.totalorder %s3964_s2, %s3964_s2 }
  0x57   : > { %p3967_p11 = pnand %p3965_p10, %p4299_p7  ;;  %p3974_p1 = por %p3973_p0, %p3972_p13 }
  0x59   : > { %p3968_p12 = pneg %p3967_p11 }
  0x5b   : > { %p3975_p4 = pnand %p3974_p1, %p3968_p12 }
  0x5d   : > { %3978 = shalt.err (!%p3975_p4)
}
  0x5e   : > { %s4152_s0 = smov 512   ;;  %s4153_s4 = smov 32  }
  0x5f   : > { %3704 = dma.hbm_to_vmem [thread:$0]  (!%p4285_p5), %s4799_s8, 8192, %s4289_s25, [#allocation11], %s4152_s0, %s4152_s0, %s4153_s4  }
  0x60   : > { %s4154_s28 = smov [#allocation2]   ;;  %s4155_s29 = smov [#allocation6]  }
  0x61   : > { %s492_s27 = sshll.u32 %s4154_s28, 4  ;;  %s514_s22 = sshll.u32 %s4155_s29, 4  ;;  %s493_s27 = int_to_ptr.vmem [resolvable:$true] %s492_s27  ;;  %s4361_s22 = int_to_ptr.vmem [resolvable:$true] %s514_s22 }
  0x62   : > { %s4829_s20 = sld [smem:[#allocation24_spill]] }
  0x68   : > { %s3979_s2 = scalar_lea.hbm %s4829_s20, 128 }
  0x69   : > { %p3980_p6 = scmp.ne.s32.totalorder %s4829_s20, %s3979_s2  ;;  %p3986_p2 = scmp.lt.u32.totalorder %s3979_s2, %s4829_s20 }
  0x6b   : > { %p3982_p8 = pnand %p3980_p6, %p4299_p7 }
  0x6d   : > { %p3983_p9 = pneg %p3982_p8 }
  0x6f   : > { %p3988_p3 = pnand %p3986_p2, %p3983_p9 }
  0x71   : > { %3991 = shalt.err (!%p3988_p3)
}
  0x72   : > { %s3992_s0 = scalar_lea.vmem %s493_s27, 128  ;;  %p4000_p13 = scmp.lt.s32.totalorder %s493_s27, %s493_s27 }
  0x73   : > { %p3993_p10 = scmp.ne.s32.totalorder %s493_s27, %s3992_s0  ;;  %p4001_p0 = scmp.lt.s32.totalorder %s3992_s0, %s3992_s0 }
  0x75   : > { %p3995_p11 = pnand %p3993_p10, %p4299_p7  ;;  %p4002_p1 = por %p4001_p0, %p4000_p13 }
  0x77   : > { %p3996_p12 = pneg %p3995_p11 }
  0x79   : > { %p4003_p4 = pnand %p4002_p1, %p3996_p12 }
  0x7b   : > { %4006 = shalt.err (!%p4003_p4)
}
  0x7c   : > { %3689 = dma.hbm_to_vmem [thread:$0]  (!%p4285_p5), %s4829_s20, 128, %s493_s27, [#allocation3]  }
  0x7d   : > { %s4007_s28 = scalar_lea.hbm %s4796_s5, 16 }
  0x7e   : > { %p4008_p6 = scmp.ne.s32.totalorder %s4796_s5, %s4007_s28  ;;  %p4014_p2 = scmp.lt.u32.totalorder %s4007_s28, %s4796_s5 }
  0x80   : > { %p4010_p8 = pnand %p4008_p6, %p4299_p7 }
  0x82   : > { %p4011_p9 = pneg %p4010_p8 }
  0x84   : > { %p4016_p3 = pnand %p4014_p2, %p4011_p9 }
  0x86   : > { %4019 = shalt.err (!%p4016_p3)
}
  0x87   : > { %s4020_s27 = scalar_lea.vmem %s4361_s22, 16  ;;  %s4027_s19 = scalar_lea.vmem %s4361_s22, 32 }
  0x88   : > { %p4021_p10 = scmp.ne.s32.totalorder %s4361_s22, %s4020_s27  ;;  %p4028_p13 = scmp.lt.s32.totalorder %s4361_s22, %s4361_s22 }
  0x89   : > { %p4029_p0 = scmp.lt.s32.totalorder %s4027_s19, %s4020_s27 }
  0x8a   : > { %p4023_p11 = pnand %p4021_p10, %p4299_p7 }
  0x8b   : > { %p4030_p1 = por %p4029_p0, %p4028_p13 }
  0x8c   : > { %p4024_p12 = pneg %p4023_p11 }
  0x8e   : > { %p4031_p4 = pnand %p4030_p1, %p4024_p12 }
  0x90   : > { %4034 = shalt.err (!%p4031_p4)
}
  0x91   : > { %3695 = dma.hbm_to_vmem [thread:$0]  (!%p4285_p5), %s4796_s5, 16, %s4361_s22, [#allocation5]  }
  0x92   : > { %s4156_s6 = smov [#allocation9]   ;;  %s4157_s4 = smov [#allocation12]  }
  0x93   : > { %s538_s18 = sshll.u32 %s4156_s6, 4  ;;  %s564_s26 = sshll.u32 %s4157_s4, 4  ;;  %s539_s18 = int_to_ptr.vmem [resolvable:$true] %s538_s18  ;;  %s4405_s26 = int_to_ptr.vmem [resolvable:$true] %s564_s26 }
  0x94   : > { %s4035_s24 = scalar_lea.hbm %s4798_s7, 64 }
  0x95   : > { %p4036_p6 = scmp.ne.s32.totalorder %s4798_s7, %s4035_s24  ;;  %p4042_p2 = scmp.lt.u32.totalorder %s4035_s24, %s4798_s7 }
  0x97   : > { %p4038_p8 = pnand %p4036_p6, %p4299_p7 }
  0x99   : > { %p4039_p9 = pneg %p4038_p8 }
  0x9b   : > { %p4044_p3 = pnand %p4042_p2, %p4039_p9 }
  0x9d   : > { %4047 = shalt.err (!%p4044_p3)
}
  0x9e   : > { %s4048_s19 = scalar_lea.vmem %s539_s18, 64  ;;  %p4056_p13 = scmp.lt.s32.totalorder %s539_s18, %s539_s18 }
  0x9f   : > { %p4049_p10 = scmp.ne.s32.totalorder %s539_s18, %s4048_s19  ;;  %p4057_p0 = scmp.lt.s32.totalorder %s4048_s19, %s4048_s19 }
  0xa1   : > { %p4051_p11 = pnand %p4049_p10, %p4299_p7  ;;  %p4058_p1 = por %p4057_p0, %p4056_p13 }
  0xa3   : > { %p4052_p12 = pneg %p4051_p11 }
  0xa5   : > { %p4059_p4 = pnand %p4058_p1, %p4052_p12 }
  0xa7   : > { %4062 = shalt.err (!%p4059_p4)
}
  0xa8   : > { %3701 = dma.hbm_to_vmem [thread:$0]  (!%p4285_p5), %s4798_s7, 64, %s539_s18, [#allocation8]  }
  0xa9   : > { %s4063_s28 = scalar_lea.hbm %s4801_s10, 4096 }
  0xaa   : > { %p4064_p6 = scmp.ne.s32.totalorder %s4801_s10, %s4063_s28  ;;  %p4070_p2 = scmp.lt.u32.totalorder %s4063_s28, %s4801_s10 }
  0xac   : > { %p4066_p8 = pnand %p4064_p6, %p4299_p7 }
  0xae   : > { %p4067_p9 = pneg %p4066_p8 }
  0xb0   : > { %p4072_p3 = pnand %p4070_p2, %p4067_p9 }
  0xb2   : > { %4075 = shalt.err (!%p4072_p3)
}
  0xb3   : > { %s4076_s18 = scalar_lea.vmem %s4405_s26, 4096  ;;  %p4084_p13 = scmp.lt.s32.totalorder %s4405_s26, %s4405_s26 }
  0xb4   : > { %p4077_p10 = scmp.ne.s32.totalorder %s4405_s26, %s4076_s18  ;;  %p4085_p0 = scmp.lt.s32.totalorder %s4076_s18, %s4076_s18 }
  0xb6   : > { %p4079_p11 = pnand %p4077_p10, %p4299_p7  ;;  %p4086_p1 = por %p4085_p0, %p4084_p13 }
  0xb8   : > { %p4080_p12 = pneg %p4079_p11 }
  0xba   : > { %p4087_p4 = pnand %p4086_p1, %p4080_p12 }
  0xbc   : > { %4090 = shalt.err (!%p4087_p4)
}
  0xbd   : > { %s4158_s27 = smov 64   ;;  %s4159_s22 = smov 4  }
  0xbe   : > { %3707 = dma.hbm_to_vmem [thread:$0]  (!%p4285_p5), %s4801_s10, 4096, %s4405_s26, [#allocation11], %s4158_s27, %s4158_s27, %s4159_s22  }
  0xbf   : > { %s4160_s0 = smov [#allocation13]   ;;  %s4091_s29 = scalar_lea.hbm %s4808_s17, 1024 }
  0xc0   : > { %s595_s6 = sshll.u32 %s4160_s0, 4  ;;  %p4092_p6 = scmp.ne.s32.totalorder %s4808_s17, %s4091_s29  ;;  %s596_s6 = int_to_ptr.vmem [resolvable:$true] %s595_s6 }
  0xc1   : > { %p4098_p2 = scmp.lt.u32.totalorder %s4091_s29, %s4808_s17 }
  0xc2   : > { %p4094_p8 = pnand %p4092_p6, %p4299_p7 }
  0xc4   : > { %p4095_p9 = pneg %p4094_p8 }
  0xc6   : > { %p4100_p3 = pnand %p4098_p2, %p4095_p9 }
  0xc8   : > { %4103 = shalt.err (!%p4100_p3)
}
  0xc9   : > { %s4104_s26 = scalar_lea.vmem %s596_s6, 1024  ;;  %p4112_p13 = scmp.lt.s32.totalorder %s596_s6, %s596_s6 }
  0xca   : > { %p4105_p10 = scmp.ne.s32.totalorder %s596_s6, %s4104_s26  ;;  %p4113_p0 = scmp.lt.s32.totalorder %s4104_s26, %s4104_s26 }
  0xcc   : > { %p4107_p11 = pnand %p4105_p10, %p4299_p7  ;;  %p4114_p1 = por %p4113_p0, %p4112_p13 }
  0xce   : > { %p4108_p12 = pneg %p4107_p11 }
  0xd0   : > { %p4115_p4 = pnand %p4114_p1, %p4108_p12 }
  0xd2   : > { %4118 = shalt.err (!%p4115_p4)
}
  0xd3   : > { %3710 = dma.hbm_to_vmem [thread:$0]  (!%p4285_p5), %s4808_s17, 1024, %s596_s6, [#allocation14], %s4158_s27, %s4158_s27, %s4159_s22  }
  0xd4   : > { %p4830_p6 = scmp.ne.s32.totalorder %s4824_s1, 0 }
  0xd5   : > { %p4831_p8 = scmp.eq.s32.totalorder (!%p4830_p6), %s4270_s21, 0 }
  0xd6   : > { %634 = sbr.rel (%p4830_p6) target bundleno = 3070 (0xbfe), region = 96 }
  0xdd   : > { %4124 = dma.done.wait (%p4831_p8), [#allocation3], 128   ;;  %p4832_p7 = pmov %p4831_p8 }
  0xdf   : > { %4126 = vsyncadd (%p4832_p7), [#allocation3], 4294967168  ;;  %p4833_p9 = pmov %p4832_p7 }
  0xe0   : > { %p4834_p2 = pmov %p4832_p7 }
  0xe1   : > { %4128 = dma.done.wait (%p4833_p9), [#allocation5], 48  }
  0xe2   : > { %4130 = vsyncadd (%p4834_p2), [#allocation5], 4294967248  ;;  %p4835_p3 = pmov %p4834_p2 }
  0xe3   : > { %p4836_p5 = pmov %p4834_p2 }
  0xe4   : > { %4132 = dma.done.wait (%p4835_p3), [#allocation8], 4160  }
  0xe5   : > { %4134 = vsyncadd (%p4836_p5), [#allocation8], 4294963136  ;;  %p4837_p10 = pmov %p4834_p2 }
  0xe6   : > { %p4838_p11 = pmov %p4834_p2 }
  0xe7   : > { %4136 = dma.done.wait (%p4837_p10), [#allocation11], 12288  }
  0xe8   : > { %4138 = vsyncadd (%p4838_p11), [#allocation11], 4294955008  ;;  %p4839_p12 = pmov %p4834_p2 }
  0xe9   : > { %p4840_p13 = pmov %p4834_p2 }
  0xea   : > { %4140 = dma.done.wait (%p4839_p12), [#allocation14], 1024  }
  0xeb   : > { %4142 = vsyncadd (%p4840_p13), [#allocation14], 4294966272  ;;  %p723_p0 = scmp.lt.s32.totalorder %s4270_s21, 1  ;;  %v4161_v0 = vmov 0.0   ;;  %vm4162_vm0 = vmmov 0   ;;  %vm754_vm1 = vcmask 1041408   ;;  %v812_v30 = vlaneseq }
  0xec   : > { %3514 = vmatprep.subr.bf16.mxu0 %v4161_v0  ;;  %3516 = vmatprep.mubr.msk.bf16.mxu0 %vm4162_vm0, %v4161_v0  ;;  %s4841_s27 = sld [smem:[#allocation21_spill]]  ;;  %s4842_s4 = sld [smem:[#allocation22_spill]]  ;;  %v742_v1 = vld [vmem:[#allocation4] sm:$0x3]  ;;  %vm750_vm2 = vcmask 31744   ;;  %v4517_v34 = vld [vmem:[#allocation2] sm:$0xff] }
  0xed   : > { %s4848_s21 = smov (!%p723_p0, %s4270_s21), 1  ;;  %3520 = vmatprep.subr.bf16.mxu1 %v4161_v0  ;;  %3522 = vmatprep.mubr.msk.bf16.mxu1 %vm4162_vm0, %v4161_v0  ;;  %v756_v4 = vsel %vm754_vm1, %v742_v1, 0  ;;  %v3239_v7 = vld [vmem:[#allocation6] ss:$0 sm:$0xff]  ;;  %v3752_v19 = vld [vmem:[#allocation7] ss:$16 sps:$4 sm:$0xff]  }
  0xee   : > { %s4499_s1 = sshll.u32 %s4848_s21, 3  ;;  %3515 = vmatpush3.bf16.msra.mxu0 %v756_v4  ;;  %3521 = vmatpush3.bf16.msra.mxu1 %v756_v4  ;;  %v3754_v20 = vld [vmem:[#allocation7 + $0x4] ss:$16 sps:$4 sm:$0xff]   ;;  %v3755_v21 = vld [vmem:[#allocation7 + $0x8] ss:$16 sps:$4 sm:$0xff]   ;;  %v4512_v32 = vshrl.u32 %v812_v30, 7 }
  0xef   : > { %v3757_v22 = vld [vmem:[#allocation7 + $0xc] ss:$16 sps:$4 sm:$0xff]   ;;  %1122 = vmatprep.subr.bf16.mxu0 %v3754_v20  ;;  %v3760_v45 = vld [vmem:[#allocation7 + $0x24] ss:$16 sps:$4 sm:$0xff]   ;;  %v3758_v47 = vld [vmem:[#allocation7 + $0x20] ss:$16 sps:$4 sm:$0xff]  }
  0xf0   : > { %1163 = vmatprep.subr.bf16.mxu1 %v3757_v22  ;;  %v4515_v33 = vsub.s32 0, %v4512_v32  ;;  %v4520_v35 = vsub.s32 1, %v4512_v32  ;;  %v3763_v46 = vld [vmem:[#allocation7 + $0x2c] ss:$16 sps:$4 sm:$0xff]   ;;  %v3761_v48 = vld [vmem:[#allocation7 + $0x28] ss:$16 sps:$4 sm:$0xff]  }
  0xf1   : > { %v3766_v49 = vld [vmem:[#allocation7 + $0x44] ss:$16 sps:$4 sm:$0xff]   ;;  %v3769_v50 = vld [vmem:[#allocation7 + $0x4c] ss:$16 sps:$4 sm:$0xff]   ;;  %v3764_v51 = vld [vmem:[#allocation7 + $0x40] ss:$16 sps:$4 sm:$0xff]  }
  0xf2   : > { %s726_s22 = scalar_lea.vmem %s4841_s27, %s4499_s1  ;;  %s730_s28 = scalar_lea.vmem %s4842_s4, %s4499_s1  ;;  %v4524_v37 = vrot.slane %v4517_v34, %v4515_v33  ;;  %v4528_v40 = vrot.slane %v4517_v34, %v4520_v35  ;;  %v3767_v52 = vld [vmem:[#allocation7 + $0x48] ss:$16 sps:$4 sm:$0xff]   ;;  %v3772_v53 = vld [vmem:[#allocation7 + $0x64] ss:$16 sps:$4 sm:$0xff]   ;;  %v3775_v54 = vld [vmem:[#allocation7 + $0x6c] ss:$16 sps:$4 sm:$0xff]  }
  0xf3   : > { %v740_v2 = vld [vmem:[%s726_s22] sm:$0xff]  ;;  %v3770_v55 = vld [vmem:[#allocation7 + $0x60] ss:$16 sps:$4 sm:$0xff]   ;;  %v3781_v58 = vld [vmem:[#allocation7 + $0x8c] ss:$16 sps:$4 sm:$0xff]   ;;  %v4542_v30 = vsub.s32 2, %v4512_v32 }
  0xf4   : > { %v822_v3 = vld [vmem:[%s730_s28] sm:$0xff]  ;;  %v741_v5 = vpack.c.bf16 %v740_v2, %v740_v2  ;;  %v3776_v59 = vld [vmem:[#allocation7 + $0x80] ss:$16 sps:$4 sm:$0xff]   ;;  %v3787_v1 = vld [vmem:[#allocation7 + $0xac] ss:$16 sps:$4 sm:$0xff]   ;;  %vm1874_vm3 = vcmask 1043456  }
  0xf5   : > { %v823_v6 = vpack.c.bf16 %v822_v3, %v822_v3  ;;  %v3773_v56 = vld [vmem:[#allocation7 + $0x68] ss:$16 sps:$4 sm:$0xff]   ;;  %v3778_v57 = vld [vmem:[#allocation7 + $0x84] ss:$16 sps:$4 sm:$0xff]   ;;  %v3782_v61 = vld [vmem:[#allocation7 + $0xa0] ss:$16 sps:$4 sm:$0xff]  }
  0xf6   : > { %3517 = vmatmul.mubr.msk.bf16.vlgmr.msra.gmra.mrb[0].mxu0 %vm750_vm2, %v741_v5  ;;  %v3779_v60 = vld [vmem:[#allocation7 + $0x88] ss:$16 sps:$4 sm:$0xff]   ;;  %v3784_v62 = vld [vmem:[#allocation7 + $0xa4] ss:$16 sps:$4 sm:$0xff]   ;;  %v3793_v3 = vld [vmem:[#allocation7 + $0xcc] ss:$16 sps:$4 sm:$0xff]  }
  0xf7   : > { %3523 = vmatmul.mubr.msk.bf16.vlgmr.msra.gmra.mrb[0].mxu1 %vm750_vm2, %v823_v6  ;;  %1123 = vmatpush1.bf16.msra.mxu0 %v3752_v19  ;;  %v3785_v63 = vld [vmem:[#allocation7 + $0xa8] ss:$16 sps:$4 sm:$0xff]   ;;  %v3790_v2 = vld [vmem:[#allocation7 + $0xc4] ss:$16 sps:$4 sm:$0xff]   ;;  %v3788_v4 = vld [vmem:[#allocation7 + $0xc0] ss:$16 sps:$4 sm:$0xff]  }
  0xf8   : > { %1164 = vmatpush1.bf16.msra.mxu1 %v3755_v21  ;;  %1124 = vmatprep.subr.bf16.mxu0 %v3760_v45  ;;  %v3791_v5 = vld [vmem:[#allocation7 + $0xc8] ss:$16 sps:$4 sm:$0xff]   ;;  %v3796_v6 = vld [vmem:[#allocation7 + $0xe4] ss:$16 sps:$4 sm:$0xff]   ;;  %s4843_s18 = sld [smem:[#allocation23_spill]]  ;;  %vm1858_vm4 = vcmask 64512  }
  0xf9   : > { %1165 = vmatprep.subr.bf16.mxu1 %v3763_v46  ;;  %s4844_s27 = sld [smem:[#allocation27_spill]]  ;;  %s4845_s6 = sld [smem:[#allocation28_spill]] }
  0xfb   : > { %1125 = vmatpush1.bf16.msra.mxu0 %v3758_v47 }
  0xfc   : > { %1166 = vmatpush1.bf16.msra.mxu1 %v3761_v48  ;;  %1126 = vmatprep.subr.bf16.mxu0 %v3766_v49  ;;  %v1217_v49 = vld [vmem:[#allocation10 + $0x40] sm:$0xff] }
  0xfd   : > { %1167 = vmatprep.subr.bf16.mxu1 %v3769_v50  ;;  %v1221_v50 = vld [vmem:[#allocation10 + $0x60] sm:$0xff] }
  0xfe   : > { %s733_s26 = scalar_lea.vmem %s4843_s18, %s4848_s21 }
  0xff   : > { %1127 = vmatpush1.bf16.msra.mxu0 %v3764_v51  ;;  %v1218_v51 = vld [vmem:[#allocation10 + $0x48] sm:$0xff]  ;;  %s737_s4 = scalar_lea.vmem %s4845_s6, %s4499_s1 }
 0x100   : > { %1168 = vmatpush1.bf16.msra.mxu1 %v3767_v52  ;;  %1128 = vmatprep.subr.bf16.mxu0 %v3772_v53  ;;  %v1222_v52 = vld [vmem:[#allocation10 + $0x68] sm:$0xff] }
 0x101   : > { %1169 = vmatprep.subr.bf16.mxu1 %v3775_v54 }
 0x103   : > { %1129 = vmatpush1.bf16.msra.mxu0 %v3770_v55 }
 0x104   : > { %1170 = vmatpush1.bf16.msra.mxu1 %v3773_v56  ;;  %1130 = vmatprep.subr.bf16.mxu0 %v3778_v57  ;;  %v3283_v56 = vcombine.high %v1217_v49, %v1221_v50  ;;  %v3285_v57 = vcombine.high %v1218_v51, %v1222_v52 }
 0x105   : > { %1171 = vmatprep.subr.bf16.mxu1 %v3781_v58  ;;  %v1225_v58 = vld [vmem:[#allocation10 + $0x80] sm:$0xff] }
 0x107   : > { %1131 = vmatpush1.bf16.msra.mxu0 %v3776_v59  ;;  %v1229_v59 = vld [vmem:[#allocation10 + $0xa0] sm:$0xff] }
 0x108   : > { %1172 = vmatpush1.bf16.msra.mxu1 %v3779_v60  ;;  %1132 = vmatprep.subr.bf16.mxu0 %v3784_v62  ;;  %v1226_v60 = vld [vmem:[#allocation10 + $0x88] sm:$0xff] }
 0x109   : > { %1173 = vmatprep.subr.bf16.mxu1 %v3787_v1  ;;  %v3291_v1 = vcombine.high %v1225_v58, %v1229_v59 }
 0x10b   : > { %1133 = vmatpush1.bf16.msra.mxu0 %v3782_v61  ;;  %v1230_v61 = vld [vmem:[#allocation10 + $0xa8] sm:$0xff] }
 0x10c   : > { %1174 = vmatpush1.bf16.msra.mxu1 %v3785_v63  ;;  %1134 = vmatprep.subr.bf16.mxu0 %v3790_v2  ;;  %v3284_v63 = vcombine.low %v1218_v51, %v1222_v52  ;;  %v3293_v2 = vcombine.high %v1226_v60, %v1230_v61  ;;  %v1269_v51 = vld [vmem:[#allocation10 + $0x1e0] sm:$0xff]  ;;  %v1266_v52 = vld [vmem:[#allocation10 + $0x1c8] sm:$0xff] }
 0x10d   : > { %1175 = vmatprep.subr.bf16.mxu1 %v3793_v3  ;;  %v1233_v3 = vld [vmem:[#allocation10 + $0xc0] sm:$0xff] }
 0x10f   : > { %1135 = vmatpush1.bf16.msra.mxu0 %v3788_v4  ;;  %v1237_v4 = vld [vmem:[#allocation10 + $0xe0] sm:$0xff] }
 0x110   : > { %1176 = vmatpush1.bf16.msra.mxu1 %v3791_v5  ;;  %1136 = vmatprep.subr.bf16.mxu0 %v3796_v6  ;;  %v1234_v5 = vld [vmem:[#allocation10 + $0xc8] sm:$0xff] }
 0x111   : > { %v1238_v6 = vld [vmem:[#allocation10 + $0xe8] sm:$0xff] }
 0x1c9   : > { %v792_v8 = vpop.f32.mrb[0].mxu0 }
 0x1ca   : > { %v861_v9 = vpop.f32.mrb[0].mxu1  ;;  %v793_v10 = vadd.f32 %v3239_v7, %v792_v8  ;;  %v3518_v11 = vpop.f32.mrb[1].mxu0  ;;  %v1213_v8 = vld [vmem:[#allocation10 + $0x20] sm:$0xff] }
 0x1cb   : > { %v3524_v12 = vpop.f32.mrb[1].mxu1  ;;  %v795_v13 = vpop.f32.mrb[2].mxu0  ;;  %v4509_v18 = vadd.f32 %v3239_v7, %v861_v9  ;;  %v1209_v7 = vld [vmem:[#allocation10] sm:$0xff]  ;;  %v1210_v9 = vld [vmem:[#allocation10 + $0x8] sm:$0xff]  ;;  %v4163_v11 = vmov 0  }
 0x1cc   : > { %v864_v14 = vpop.f32.mrb[2].mxu1  ;;  %798 = vadd.xlane.f32.xlu0 %v793_v10  ;;  %v3519_v15 = vpop.f32.mrb[3].mxu0  ;;  %v801_v17 = vmul.f32 %v793_v10, %v793_v10  ;;  %1154 = vmatprep.mubr.bf16.mxu0 %v4163_v11  ;;  %v3274_v12 = vcombine.low %v1209_v7, %v1213_v8  ;;  %v1214_v13 = vld [vmem:[#allocation10 + $0x28] sm:$0xff] }
 0x1cd   : > { %v3525_v16 = vpop.f32.mrb[3].mxu1  ;;  %v870_v44 = vmul.f32 %v4509_v18, %v4509_v18  ;;  %1195 = vmatprep.mubr.bf16.mxu1 %v4163_v11  ;;  %v3276_v14 = vcombine.low %v1210_v9, %v1214_v13  ;;  %v3794_v15 = vld [vmem:[#allocation7 + $0xe0] ss:$16 sps:$4 sm:$0xff]   ;;  %v3277_v19 = vcombine.high %v1210_v9, %v1214_v13  ;;  %v3299_v9 = vcombine.high %v1233_v3, %v1237_v4  ;;  %v1245_v13 = vld [vmem:[#allocation10 + $0x120] sm:$0xff] }
 0x1ce   : > { %v3797_v16 = vld [vmem:[#allocation7 + $0xe8] ss:$16 sps:$4 sm:$0xff]   ;;  %1137 = vmatpush1.bf16.msra.mxu0 %v3794_v15  ;;  %v1246_v15 = vld [vmem:[#allocation10 + $0x128] sm:$0xff] }
 0x1d0   : > { %802 = vadd.xlane.f32.xlu0 %v801_v17  ;;  %v3275_v17 = vcombine.high %v1209_v7, %v1213_v8  ;;  %v3290_v7 = vcombine.low %v1225_v58, %v1229_v59  ;;  %v3292_v8 = vcombine.low %v1226_v60, %v1230_v61  ;;  %v1215_v58 = vld [vmem:[#allocation10 + $0x30] sm:$0xff]  ;;  %v1212_v59 = vld [vmem:[#allocation10 + $0x18] sm:$0xff] }
 0x1d1   : > { %v1216_v60 = vld [vmem:[#allocation10 + $0x38] sm:$0xff] }
 0x1d2   : > { %1635 = vmatprep.subr.bf16.mxu0 %v3275_v17  ;;  %v3300_v17 = vcombine.low %v1234_v5, %v1238_v6 }
 0x1d4   : > { %867 = vadd.xlane.f32.xlu0 %v4509_v18 }
 0x259   : > { %v799_v23 = vpop.xlane.xlu0 %798 }
 0x25a   : > { %v800_v24 = vmul.f32 0.03125, %v799_v23 }
 0x25c   : > { %v805_v26 = vmul.f32 %v800_v24, %v800_v24  ;;  %v808_v36 = vsub.f32 %v793_v10, %v800_v24  ;;  %v3799_v10 = vld [vmem:[#allocation7 + $0xec] ss:$16 sps:$4 sm:$0xff]  }
 0x25d   : > { %v803_v25 = vpop.xlane.xlu0 %802  ;;  %1177 = vmatprep.subr.bf16.mxu1 %v3799_v10  ;;  %v3301_v10 = vcombine.high %v1234_v5, %v1238_v6  ;;  %v1224_v5 = vld [vmem:[#allocation10 + $0x78] sm:$0xff]  ;;  %v3280_v6 = vcombine.low %v1212_v59, %v1216_v60 }
 0x25e   : > { %v804_v27 = vmul.f32 0.03125, %v803_v25  ;;  %1178 = vmatpush1.bf16.msra.mxu1 %v3797_v16  ;;  %v3298_v16 = vcombine.low %v1233_v3, %v1237_v4  ;;  %v1223_v3 = vld [vmem:[#allocation10 + $0x70] sm:$0xff]  ;;  %v1220_v4 = vld [vmem:[#allocation10 + $0x58] sm:$0xff] }
 0x25f   : > { %1676 = vmatprep.subr.bf16.mxu1 %v3277_v19 }
 0x260   : > { %v806_v28 = vsub.f32 %v804_v27, %v805_v26 }
 0x262   : > { %v807_v29 = vmax.f32 %v806_v28, 0.0  ;;  %v868_v28 = vpop.xlane.xlu0 %867 }
 0x264   : > { %v809_v31 = vadd.f32 1e-05, %v807_v29 }
 0x266   : > { %3864 = vrsqrt.f32 %v809_v31  ;;  %v4544_v31 = vmul.f32 0.03125, %v868_v28 }
 0x270   : > { %v3865_v38 = vpop.eup %3864 }
 0x271   : > { %v811_v39 = vmul.f32 %v3865_v38, %v808_v36  ;;  %v4547_v36 = vsub.s32 3, %v4512_v32  ;;  %v874_v38 = vmul.f32 %v4544_v31, %v4544_v31 }
 0x273   : > { %v816_v41 = vmul.f32 %v4524_v37, %v811_v39  ;;  %v905_v46 = vrot.slane %v4517_v34, %v4547_v36 }
 0x275   : > { %v4532_v42 = vadd.f32 %v4528_v40, %v816_v41 }
 0x277   : > { %883 = vadd.xlane.f32.xlu1 %v4532_v42  ;;  %v886_v43 = vmul.f32 %v4532_v42, %v4532_v42 }
 0x27b   : > { %887 = vadd.xlane.f32.xlu1 %v886_v43  ;;  %v900_v43 = vrot.slane %v4517_v34, %v4542_v30  ;;  %v3282_v34 = vcombine.low %v1217_v49, %v1221_v50  ;;  %v1265_v49 = vld [vmem:[#allocation10 + $0x1c0] sm:$0xff] }
 0x27c   : > { %v3330_v61 = vcombine.low %v1265_v49, %v1269_v51 }
 0x27f   : > { %871 = vadd.xlane.f32.xlu1 %v870_v44 }
 0x304   : > { %v884_v20 = vpop.xlane.xlu1 %883 }
 0x305   : > { %v885_v21 = vmul.f32 0.03125, %v884_v20 }
 0x307   : > { %v890_v23 = vmul.f32 %v885_v21, %v885_v21  ;;  %v893_v41 = vsub.f32 %v4532_v42, %v885_v21  ;;  %v1249_v21 = vld [vmem:[#allocation10 + $0x140] sm:$0xff] }
 0x308   : > { %v888_v22 = vpop.xlane.xlu1 %887 }
 0x309   : > { %v889_v24 = vmul.f32 0.03125, %v888_v22  ;;  %v1253_v22 = vld [vmem:[#allocation10 + $0x160] sm:$0xff] }
 0x30b   : > { %v891_v25 = vsub.f32 %v889_v24, %v890_v23  ;;  %v1250_v23 = vld [vmem:[#allocation10 + $0x148] sm:$0xff] }
 0x30c   : > { %v872_v29 = vpop.xlane.xlu1 %871  ;;  %v1254_v24 = vld [vmem:[#allocation10 + $0x168] sm:$0xff] }
 0x30d   : > { %v892_v26 = vmax.f32 %v891_v25, 0.0  ;;  %v873_v39 = vmul.f32 0.03125, %v872_v29  ;;  %v3317_v28 = vcombine.high %v1250_v23, %v1254_v24  ;;  %v1257_v29 = vld [vmem:[#allocation10 + $0x180] sm:$0xff] }
 0x30f   : > { %v894_v27 = vadd.f32 1e-05, %v892_v26  ;;  %v875_v47 = vsub.f32 %v873_v39, %v874_v38  ;;  %v1261_v39 = vld [vmem:[#allocation10 + $0x1a0] sm:$0xff] }
 0x311   : > { %3866 = vrsqrt.f32 %v894_v27  ;;  %v876_v54 = vmax.f32 %v875_v47, 0.0  ;;  %v3315_v27 = vcombine.high %v1249_v21, %v1253_v22  ;;  %v3323_v47 = vcombine.high %v1257_v29, %v1261_v39 }
 0x313   : > { %v878_v62 = vadd.f32 1e-05, %v876_v54  ;;  %v3322_v54 = vcombine.low %v1257_v29, %v1261_v39  ;;  %v1244_v29 = vld [vmem:[#allocation10 + $0x118] sm:$0xff] }
 0x315   : > { %3868 = vrsqrt.f32 %v878_v62 }
 0x31b   : > { %v3867_v44 = vpop.eup %3866 }
 0x31c   : > { %v896_v45 = vmul.f32 %v3867_v44, %v893_v41  ;;  %v1258_v41 = vld [vmem:[#allocation10 + $0x188] sm:$0xff]  ;;  %v877_v44 = vsub.f32 %v4509_v18, %v4544_v31  ;;  %v3331_v18 = vcombine.high %v1265_v49, %v1269_v51 }
 0x31e   : > { %v901_v48 = vmul.f32 %v900_v43, %v896_v45  ;;  %v1262_v43 = vld [vmem:[#allocation10 + $0x1a8] sm:$0xff]  ;;  %v3314_v45 = vcombine.low %v1249_v21, %v1253_v22  ;;  %v1236_v21 = vld [vmem:[#allocation10 + $0xd8] sm:$0xff] }
 0x31f   : > { %v3869_v38 = vpop.eup %3868  ;;  %v1240_v22 = vld [vmem:[#allocation10 + $0xf8] sm:$0xff] }
 0x320   : > { %v906_v53 = vadd.f32 %v905_v46, %v901_v48  ;;  %v3316_v46 = vcombine.low %v1250_v23, %v1254_v24  ;;  %v3325_v48 = vcombine.high %v1258_v41, %v1262_v43  ;;  %v880_v50 = vmul.f32 %v3869_v38, %v877_v44  ;;  %v1248_v38 = vld [vmem:[#allocation10 + $0x138] sm:$0xff]  ;;  %v1251_v44 = vld [vmem:[#allocation10 + $0x150] sm:$0xff] }
 0x321   : > { %v3312_v49 = vcombine.low %v1244_v29, %v1248_v38 }
 0x322   : > { %v907_v55 = vpack.c.bf16 %v906_v53, %v906_v53  ;;  %v1270_v53 = vld [vmem:[#allocation10 + $0x1e8] sm:$0xff] }
 0x323   : > { %v3333_v31 = vcombine.high %v1266_v52, %v1270_v53  ;;  %v3332_v62 = vcombine.low %v1266_v52, %v1270_v53  ;;  %v1259_v52 = vld [vmem:[#allocation10 + $0x190] sm:$0xff] }
 0x324   : > { %1155 = vmatmul.mubr.bf16.vlgmr.msra.gmra.mrb[4].mxu0 %v907_v55  ;;  %1196 = vmatmul.mubr.bf16.vlgmr.msra.gmra.mrb[4].mxu1 %v907_v55  ;;  %v3324_v55 = vcombine.low %v1258_v41, %v1262_v43  ;;  %v3304_v41 = vcombine.low %v1236_v21, %v1240_v22  ;;  %v1263_v53 = vld [vmem:[#allocation10 + $0x1b0] sm:$0xff] }
 0x325   : > { %1636 = vmatpush1.bf16.msra.mxu0 %v3274_v12  ;;  %1677 = vmatpush1.bf16.msra.mxu1 %v3276_v14  ;;  %v1241_v12 = vld [vmem:[#allocation10 + $0x100] sm:$0xff]  ;;  %v1242_v14 = vld [vmem:[#allocation10 + $0x108] sm:$0xff] }
 0x326   : > { %1637 = vmatprep.subr.bf16.mxu0 %v3283_v56  ;;  %1678 = vmatprep.subr.bf16.mxu1 %v3285_v57  ;;  %v3307_v19 = vcombine.high %v1241_v12, %v1245_v13  ;;  %v3309_v20 = vcombine.high %v1242_v14, %v1246_v15  ;;  %v3306_v25 = vcombine.low %v1241_v12, %v1245_v13  ;;  %v1211_v57 = vld [vmem:[#allocation10 + $0x10] sm:$0xff]  ;;  %v1228_v13 = vld [vmem:[#allocation10 + $0x98] sm:$0xff] }
 0x327   : > { %1667 = vmatprep.mubr.bf16.mxu0 %v4163_v11  ;;  %1708 = vmatprep.mubr.bf16.mxu1 %v4163_v11  ;;  %v3308_v26 = vcombine.low %v1242_v14, %v1246_v15  ;;  %v881_v56 = vmul.f32 %v880_v50, %v4524_v37  ;;  %v3278_v37 = vcombine.low %v1211_v57, %v1215_v58  ;;  %v1231_v12 = vld [vmem:[#allocation10 + $0xb0] sm:$0xff] }
 0x328   : > { %v3288_v15 = vcombine.low %v1220_v4, %v1224_v5 }
 0x329   : > { %1638 = vmatpush1.bf16.msra.mxu0 %v3282_v34  ;;  %1679 = vmatpush1.bf16.msra.mxu1 %v3284_v63  ;;  %v882_v34 = vadd.f32 %v881_v56, %v4528_v40  ;;  %v3279_v63 = vcombine.high %v1211_v57, %v1215_v58  ;;  %v1232_v40 = vld [vmem:[#allocation10 + $0xb8] sm:$0xff]  ;;  %v3327_v56 = vcombine.high %v1259_v52, %v1263_v53  ;;  %v1267_v58 = vld [vmem:[#allocation10 + $0x1d0] sm:$0xff] }
 0x32a   : > { %1639 = vmatprep.subr.bf16.mxu0 %v3291_v1  ;;  %1680 = vmatprep.subr.bf16.mxu1 %v3293_v2  ;;  %v3281_v1 = vcombine.high %v1212_v59, %v1216_v60  ;;  %v1219_v2 = vld [vmem:[#allocation10 + $0x50] sm:$0xff]  ;;  %v3296_v24 = vcombine.low %v1228_v13, %v1232_v40  ;;  %v1268_v60 = vld [vmem:[#allocation10 + $0x1d8] sm:$0xff] }
 0x32b   : > { %v3286_v14 = vcombine.low %v1219_v2, %v1223_v3  ;;  %v1271_v59 = vld [vmem:[#allocation10 + $0x1f0] sm:$0xff] }
 0x32d   : > { %1640 = vmatpush1.bf16.msra.mxu0 %v3290_v7  ;;  %1681 = vmatpush1.bf16.msra.mxu1 %v3292_v8  ;;  %v4562_v7 = vpack.c.bf16 %v882_v34, %v882_v34  ;;  %v3287_v8 = vcombine.high %v1219_v2, %v1223_v3  ;;  %v3334_v2 = vcombine.low %v1267_v58, %v1271_v59 }
 0x32e   : > { %1641 = vmatprep.subr.bf16.mxu0 %v3299_v9  ;;  %1682 = vmatprep.subr.bf16.mxu1 %v3301_v10  ;;  %v3289_v9 = vcombine.high %v1220_v4, %v1224_v5  ;;  %v1227_v10 = vld [vmem:[#allocation10 + $0x90] sm:$0xff] }
 0x32f   : > { %v3294_v23 = vcombine.low %v1227_v10, %v1231_v12 }
 0x331   : > { %1642 = vmatpush1.bf16.msra.mxu0 %v3298_v16  ;;  %1683 = vmatpush1.bf16.msra.mxu1 %v3300_v17  ;;  %v3295_v16 = vcombine.high %v1227_v10, %v1231_v12  ;;  %v3297_v17 = vcombine.high %v1228_v13, %v1232_v40  ;;  %v1273_v13 = vld [vmem:[%s4800_s9] sm:$0xff]  ;;  %v940_v40 = vld [vmem:[#allocation9] sm:$0xf] }
 0x332   : > { %1643 = vmatprep.subr.bf16.mxu0 %v3307_v19  ;;  %1684 = vmatprep.subr.bf16.mxu1 %v3309_v20  ;;  %v1235_v19 = vld [vmem:[#allocation10 + $0xd0] sm:$0xff] }
 0x333   : > { %v1239_v20 = vld [vmem:[#allocation10 + $0xf0] sm:$0xff] }
 0x334   : > { %v3302_v39 = vcombine.low %v1235_v19, %v1239_v20 }
 0x335   : > { %1644 = vmatpush1.bf16.msra.mxu0 %v3306_v25  ;;  %1685 = vmatpush1.bf16.msra.mxu1 %v3308_v26  ;;  %v3303_v25 = vcombine.high %v1235_v19, %v1239_v20  ;;  %v3305_v26 = vcombine.high %v1236_v21, %v1240_v22 }
 0x336   : > { %1645 = vmatprep.subr.bf16.mxu0 %v3315_v27  ;;  %1686 = vmatprep.subr.bf16.mxu1 %v3317_v28  ;;  %v1243_v27 = vld [vmem:[#allocation10 + $0x110] sm:$0xff] }
 0x337   : > { %v1247_v28 = vld [vmem:[#allocation10 + $0x130] sm:$0xff] }
 0x338   : > { %v3311_v43 = vcombine.high %v1243_v27, %v1247_v28 }
 0x339   : > { %1646 = vmatpush1.bf16.msra.mxu0 %v3314_v45  ;;  %1687 = vmatpush1.bf16.msra.mxu1 %v3316_v46  ;;  %v1255_v45 = vld [vmem:[#allocation10 + $0x170] sm:$0xff]  ;;  %v1252_v46 = vld [vmem:[#allocation10 + $0x158] sm:$0xff] }
 0x33a   : > { %1647 = vmatprep.subr.bf16.mxu0 %v3323_v47  ;;  %1688 = vmatprep.subr.bf16.mxu1 %v3325_v48  ;;  %v1256_v47 = vld [vmem:[#allocation10 + $0x178] sm:$0xff]  ;;  %v3310_v48 = vcombine.low %v1243_v27, %v1247_v28  ;;  %v3319_v50 = vcombine.high %v1251_v44, %v1255_v45 }
 0x33b   : > { %v3321_v51 = vcombine.high %v1252_v46, %v1256_v47 }
 0x33d   : > { %1648 = vmatpush1.bf16.msra.mxu0 %v3322_v54  ;;  %1689 = vmatpush1.bf16.msra.mxu1 %v3324_v55  ;;  %v1260_v54 = vld [vmem:[#allocation10 + $0x198] sm:$0xff] }
 0x33e   : > { %1649 = vmatprep.subr.bf16.mxu0 %v3331_v18  ;;  %1690 = vmatprep.subr.bf16.mxu1 %v3333_v31  ;;  %v1264_v55 = vld [vmem:[#allocation10 + $0x1b8] sm:$0xff]  ;;  %v3318_v18 = vcombine.low %v1251_v44, %v1255_v45  ;;  %v3320_v31 = vcombine.low %v1252_v46, %v1256_v47 }
 0x33f   : > { %v3329_v57 = vcombine.high %v1260_v54, %v1264_v55  ;;  %v3328_v34 = vcombine.low %v1260_v54, %v1264_v55  ;;  %v1297_v55 = vsub.s32 5, %v4512_v32 }
 0x341   : > { %1650 = vmatpush1.bf16.msra.mxu0 %v3330_v61  ;;  %1691 = vmatpush1.bf16.msra.mxu1 %v3332_v62  ;;  %v1272_v61 = vld [vmem:[#allocation10 + $0x1f8] sm:$0xff]  ;;  %v3326_v62 = vcombine.low %v1259_v52, %v1263_v53  ;;  %v1301_v52 = vsub.s32 6, %v4512_v32 }
 0x342   : > { %1717 = vmatprep.subr.bf16.mxu0 %v3279_v63  ;;  %1758 = vmatprep.subr.bf16.mxu1 %v3281_v1  ;;  %v3335_v63 = vcombine.high %v1267_v58, %v1271_v59  ;;  %v3337_v1 = vcombine.high %v1268_v60, %v1272_v61  ;;  %v3336_v3 = vcombine.low %v1268_v60, %v1272_v61 }
 0x343   : > { %v1298_v58 = vrot.slane %v1273_v13, %v1297_v55 }
 0x344   : > { %1668 = vmatmul.mubr.bf16.vlgmr.msra.gmra.mrb[8].mxu0 %v4562_v7  ;;  %1709 = vmatmul.mubr.bf16.vlgmr.msra.gmra.mrb[8].mxu1 %v4562_v7 }
 0x345   : > { %1718 = vmatpush1.bf16.msra.mxu0 %v3278_v37  ;;  %1759 = vmatpush1.bf16.msra.mxu1 %v3280_v6 }
 0x346   : > { %1719 = vmatprep.subr.bf16.mxu0 %v3287_v8  ;;  %1760 = vmatprep.subr.bf16.mxu1 %v3289_v9 }
 0x347   : > { %1749 = vmatprep.mubr.bf16.mxu0 %v4163_v11  ;;  %1790 = vmatprep.mubr.bf16.mxu1 %v4163_v11  ;;  %v3313_v11 = vcombine.high %v1244_v29, %v1248_v38  ;;  %v949_v29 = vrot.slane %v940_v40, %v4520_v35 }
 0x349   : > { %1720 = vmatpush1.bf16.msra.mxu0 %v3286_v14  ;;  %1761 = vmatpush1.bf16.msra.mxu1 %v3288_v15  ;;  %v945_v14 = vrot.slane %v940_v40, %v4515_v33 }
 0x34a   : > { %1721 = vmatprep.subr.bf16.mxu0 %v3295_v16  ;;  %1762 = vmatprep.subr.bf16.mxu1 %v3297_v17 }
 0x34d   : > { %1722 = vmatpush1.bf16.msra.mxu0 %v3294_v23  ;;  %1763 = vmatpush1.bf16.msra.mxu1 %v3296_v24 }
 0x34e   : > { %1723 = vmatprep.subr.bf16.mxu0 %v3303_v25  ;;  %1764 = vmatprep.subr.bf16.mxu1 %v3305_v26  ;;  %v1282_v25 = vrot.slane %v1273_v13, %v4520_v35 }
 0x351   : > { %1724 = vmatpush1.bf16.msra.mxu0 %v3302_v39  ;;  %1765 = vmatpush1.bf16.msra.mxu1 %v3304_v41  ;;  %v1286_v41 = vrot.slane %v1273_v13, %v4542_v30 }
 0x352   : > { %1725 = vmatprep.subr.bf16.mxu0 %v3311_v43  ;;  %1766 = vmatprep.subr.bf16.mxu1 %v3313_v11  ;;  %v953_v11 = vrot.slane %v940_v40, %v4542_v30 }
 0x355   : > { %1726 = vmatpush1.bf16.msra.mxu0 %v3310_v48  ;;  %1767 = vmatpush1.bf16.msra.mxu1 %v3312_v49  ;;  %v1290_v48 = vrot.slane %v1273_v13, %v4547_v36 }
 0x356   : > { %1727 = vmatprep.subr.bf16.mxu0 %v3319_v50  ;;  %1768 = vmatprep.subr.bf16.mxu1 %v3321_v51  ;;  %v957_v50 = vrot.slane %v940_v40, %v4547_v36  ;;  %v1293_v51 = vsub.s32 4, %v4512_v32  ;;  %v1302_v36 = vrot.slane %v1273_v13, %v1301_v52 }
 0x359   : > { %1728 = vmatpush1.bf16.msra.mxu0 %v3318_v18  ;;  %1769 = vmatpush1.bf16.msra.mxu1 %v3320_v31  ;;  %v1305_v18 = vsub.s32 7, %v4512_v32 }
 0x35a   : > { %1729 = vmatprep.subr.bf16.mxu0 %v3327_v56  ;;  %1770 = vmatprep.subr.bf16.mxu1 %v3329_v57  ;;  %v1294_v56 = vrot.slane %v1273_v13, %v1293_v51 }
 0x35b   : > { %v1306_v59 = vrot.slane %v1273_v13, %v1305_v18 }
 0x35d   : > { %1730 = vmatpush1.bf16.msra.mxu0 %v3326_v62  ;;  %1771 = vmatpush1.bf16.msra.mxu1 %v3328_v34 }
 0x35e   : > { %1731 = vmatprep.subr.bf16.mxu0 %v3335_v63  ;;  %1772 = vmatprep.subr.bf16.mxu1 %v3337_v1 }
 0x361   : > { %1732 = vmatpush1.bf16.msra.mxu0 %v3334_v2  ;;  %1773 = vmatpush1.bf16.msra.mxu1 %v3336_v3 }
 0x362   : > { %3526 = vmatprep.subr.bf16.mxu0 %v4161_v0  ;;  %3532 = vmatprep.subr.bf16.mxu1 %v4161_v0 }
 0x364   : > { %1750 = vmatmul.mubr.bf16.vlgmr.msra.gmra.mrb[12].mxu0 %v4562_v7  ;;  %1791 = vmatmul.mubr.bf16.vlgmr.msra.gmra.mrb[12].mxu1 %v4562_v7  ;;  %v1278_v7 = vrot.slane %v1273_v13, %v4515_v33 }
 0x365   : > { %3528 = vmatprep.mubr.msk.bf16.mxu0 %vm4162_vm0, %v4161_v0  ;;  %3534 = vmatprep.mubr.msk.bf16.mxu1 %vm4162_vm0, %v4161_v0 }
 0x3f7   : > { %v1156_v4 = vpop.f32.mrb[4].mxu0  ;;  %v1197_v5 = vpop.f32.mrb[4].mxu1 }
 0x3f8   : > { %v1158_v37 = vpop.f32.mrb[5].mxu0  ;;  %v1199_v6 = vpop.f32.mrb[5].mxu1  ;;  %v1157_v21 = vadd.f32 %v1156_v4, %v945_v14  ;;  %v1198_v35 = vadd.f32 %v1197_v5, %v953_v11 }
 0x3f9   : > { %v1160_v8 = vpop.f32.mrb[6].mxu0  ;;  %v1201_v9 = vpop.f32.mrb[6].mxu1  ;;  %v1159_v39 = vadd.f32 %v1158_v37, %v949_v29  ;;  %v1200_v54 = vadd.f32 %v1199_v6, %v957_v50 }
 0x3fa   : > { %v1161_v10 = vpop.f32.mrb[7].mxu0  ;;  %v1202_v12 = vpop.f32.mrb[7].mxu1  ;;  %v1204_v28 = vmul.f32 0.35355338, %v1157_v21  ;;  %v1206_v49 = vmul.f32 0.35355338, %v1198_v35 }
 0x3fb   : > { %v1205_v44 = vmul.f32 0.35355338, %v1159_v39  ;;  %v1207_v57 = vmul.f32 0.35355338, %v1200_v54 }
 0x3fc   : > { %v1799_v38 = vpack.c.bf16 %v1204_v28, %v1204_v28  ;;  %v1801_v53 = vpack.c.bf16 %v1206_v49, %v1206_v49 }
 0x3fd   : > { %v1800_v46 = vpack.c.bf16 %v1205_v44, %v1205_v44  ;;  %v1802_v2 = vpack.c.bf16 %v1207_v57, %v1207_v57 }
 0x417   : > { %v1669_v15 = vpop.f32.mrb[8].mxu0  ;;  %v1710_v16 = vpop.f32.mrb[8].mxu1 }
 0x418   : > { %v1670_v17 = vadd.f32 %v1669_v15, %v1278_v7  ;;  %v1671_v19 = vpop.f32.mrb[9].mxu0  ;;  %v1712_v20 = vpop.f32.mrb[9].mxu1  ;;  %v1711_v45 = vadd.f32 %v1710_v16, %v1286_v41  ;;  %v3338_v16 = vld [vmem:[%s733_s26] ss:$0 sm:$0xff] }
 0x419   : > { %v1673_v22 = vpop.f32.mrb[10].mxu0  ;;  %v1714_v23 = vpop.f32.mrb[10].mxu1  ;;  %v1672_v33 = vadd.f32 %v1671_v19, %v1282_v25  ;;  %v1713_v30 = vadd.f32 %v1712_v20, %v1290_v48 }
 0x41a   : > { %v1803_v24 = vpack.c.bf16 %v1670_v17, %v1670_v17  ;;  %v1674_v26 = vpop.f32.mrb[11].mxu0  ;;  %v1715_v27 = vpop.f32.mrb[11].mxu1  ;;  %v1805_v47 = vpack.c.bf16 %v1711_v45, %v1711_v45 }
 0x41b   : > { %v1804_v43 = vpack.c.bf16 %v1672_v33, %v1672_v33  ;;  %v1806_v31 = vpack.c.bf16 %v1713_v30, %v1713_v30 }
 0x41c   : > { %3527 = vmatpush3.bf16.xpose.msra.mxu0 %v1803_v24 }
 0x41d   : > { %3538 = vmatprep.subr.bf16.mxu0 %v4161_v0 }
 0x423   : > { %3529 = vmatmul.mubr.bf16.vlgmr.msra.gmra.mrb[16].mxu0 %v1799_v38 }
 0x424   : > { %3539 = vmatpush3.bf16.xpose.msra.mxu0 %v1804_v43  ;;  %3540 = vmatprep.mubr.msk.bf16.mxu0 %vm4162_vm0, %v4161_v0 }
 0x425   : > { %3550 = vmatprep.subr.bf16.mxu0 %v4161_v0 }
 0x42b   : > { %3541 = vmatmul.mubr.bf16.vlgmr.msra.gmra.mrb[20].mxu0 %v1800_v46 }
 0x42c   : > { %3551 = vmatpush3.bf16.xpose.msra.mxu0 %v1805_v47  ;;  %3552 = vmatprep.mubr.msk.bf16.mxu0 %vm4162_vm0, %v4161_v0 }
 0x42d   : > { %3562 = vmatprep.subr.bf16.mxu0 %v4161_v0 }
 0x433   : > { %3553 = vmatmul.mubr.bf16.vlgmr.msra.gmra.mrb[24].mxu0 %v1801_v53 }
 0x434   : > { %3563 = vmatpush3.bf16.xpose.msra.mxu0 %v1806_v31  ;;  %3564 = vmatprep.mubr.msk.bf16.mxu0 %vm4162_vm0, %v4161_v0 }
 0x437   : > { %v1751_v60 = vpop.f32.mrb[12].mxu0  ;;  %v1792_v61 = vpop.f32.mrb[12].mxu1 }
 0x438   : > { %v1752_v62 = vadd.f32 %v1751_v60, %v1294_v56  ;;  %v1793_v34 = vadd.f32 %v1792_v61, %v1302_v36  ;;  %v1753_v63 = vpop.f32.mrb[13].mxu0  ;;  %v1794_v1 = vpop.f32.mrb[13].mxu1 }
 0x439   : > { %v1754_v3 = vadd.f32 %v1753_v63, %v1298_v58  ;;  %v1795_v4 = vadd.f32 %v1794_v1, %v1306_v59  ;;  %v1755_v5 = vpop.f32.mrb[14].mxu0  ;;  %v1796_v37 = vpop.f32.mrb[14].mxu1 }
 0x43a   : > { %v1807_v6 = vpack.c.bf16 %v1752_v62, %v1752_v62  ;;  %v1809_v8 = vpack.c.bf16 %v1793_v34, %v1793_v34  ;;  %v1756_v9 = vpop.f32.mrb[15].mxu0  ;;  %v1797_v10 = vpop.f32.mrb[15].mxu1  ;;  %v3800_v5 = vld [vmem:[#allocation12 + $0x40] sm:$0xff]  }
 0x43b   : > { %v1808_v12 = vpack.c.bf16 %v1754_v3, %v1754_v3  ;;  %v1810_v40 = vpack.c.bf16 %v1795_v4, %v1795_v4  ;;  %3565 = vmatmul.mubr.bf16.vlgmr.msra.gmra.mrb[28].mxu0 %v1802_v2  ;;  %v3801_v37 = vld [vmem:[#allocation12] sm:$0xff]   ;;  %3434 = vmatprep.subr.bf16.mxu0 %v3800_v5  ;;  %v3804_v9 = vld [vmem:[#allocation12 + $0x50] sm:$0xff]  }
 0x43c   : > { %v1876_v13 = vsel %vm1874_vm3, %v1807_v6, 0  ;;  %v4608_v7 = vsel %vm1874_vm3, %v1809_v8, 0  ;;  %v3802_v6 = vld [vmem:[#allocation12 + $0x48] sm:$0xff]   ;;  %3435 = vmatpush3.bf16.msra.mxu0 %v3801_v37  ;;  %v3805_v10 = vld [vmem:[#allocation12 + $0x10] sm:$0xff]  }
 0x43d   : > { %v4610_v14 = vsel %vm1874_vm3, %v1808_v12, 0  ;;  %v4612_v15 = vsel %vm1874_vm3, %v1810_v40, 0  ;;  %3533 = vmatpush3.bf16.msra.mxu1 %v1876_v13  ;;  %v3803_v8 = vld [vmem:[#allocation12 + $0x8] sm:$0xff]   ;;  %3436 = vmatprep.subr.bf16.mxu0 %v3802_v6  ;;  %v3806_v12 = vld [vmem:[#allocation12 + $0x58] sm:$0xff]   ;;  %v3809_v13 = vld [vmem:[#allocation12 + $0x60] sm:$0xff]  }
 0x43e   : > { %3544 = vmatprep.subr.bf16.mxu1 %v4161_v0  ;;  %v3807_v40 = vld [vmem:[#allocation12 + $0x18] sm:$0xff]  }
 0x43f   : > { %v3841_v6 = vld [vmem:[%s4804_s13 + $0x8] sm:$0xff]  }
 0x440   : > { %3437 = vmatpush3.bf16.msra.mxu0 %v3803_v8 }
 0x441   : > { %3438 = vmatprep.subr.bf16.mxu0 %v3804_v9 }
 0x444   : > { %3439 = vmatpush3.bf16.msra.mxu0 %v3805_v10 }
 0x445   : > { %3440 = vmatprep.subr.bf16.mxu0 %v3806_v12 }
 0x448   : > { %3441 = vmatpush3.bf16.msra.mxu0 %v3807_v40 }
 0x449   : > { %3442 = vmatprep.subr.bf16.mxu0 %v3809_v13 }
 0x4f6   : > { %v1852_v17 = vpop.f32.mrb[16].mxu0 }
 0x4f7   : > { %v1853_v19 = vadd.f32 %v3338_v16, %v1852_v17  ;;  %v3530_v20 = vpop.f32.mrb[17].mxu0 }
 0x4f8   : > { %v1855_v21 = vpop.f32.mrb[18].mxu0 }
 0x4f9   : > { %v3531_v22 = vpop.f32.mrb[19].mxu0  ;;  %v1859_v23 = vsel %vm1858_vm4, %v1853_v19, -inf }
 0x4fa   : > { %1860 = vmax.xlane.f32.xlu0 %v1859_v23 }
 0x4fe   : > { %v1952_v24 = vpop.f32.mrb[20].mxu0 }
 0x4ff   : > { %v1953_v25 = vadd.f32 %v3338_v16, %v1952_v24  ;;  %v3542_v26 = vpop.f32.mrb[21].mxu0 }
 0x500   : > { %v1955_v27 = vpop.f32.mrb[22].mxu0 }
 0x501   : > { %v3543_v28 = vpop.f32.mrb[23].mxu0  ;;  %v1958_v29 = vsel %vm1858_vm4, %v1953_v25, -inf }
 0x502   : > { %1959 = vmax.xlane.f32.xlu1 %v1958_v29 }
 0x506   : > { %v2050_v33 = vpop.f32.mrb[24].mxu0 }
 0x507   : > { %v2051_v38 = vadd.f32 %v3338_v16, %v2050_v33  ;;  %v3554_v39 = vpop.f32.mrb[25].mxu0  ;;  %v3808_v33 = vld [vmem:[#allocation12 + $0xc0] sm:$0xff]  }
 0x508   : > { %v2053_v41 = vpop.f32.mrb[26].mxu0  ;;  %v3810_v39 = vld [vmem:[#allocation12 + $0x80] sm:$0xff]  }
 0x509   : > { %v3555_v43 = vpop.f32.mrb[27].mxu0  ;;  %v2056_v11 = vsel %vm1858_vm4, %v2051_v38, -inf }
 0x50a   : > { %2057 = vmax.xlane.f32.xlu0 %v2056_v11  ;;  %v3812_v43 = vld [vmem:[#allocation12 + $0xc8] sm:$0xff]  }
 0x50b   : > { %v3813_v11 = vld [vmem:[#allocation12 + $0x68] sm:$0xff]  }
 0x50e   : > { %v2148_v44 = vpop.f32.mrb[28].mxu0 }
 0x50f   : > { %v2149_v45 = vadd.f32 %v3338_v16, %v2148_v44  ;;  %v3566_v35 = vpop.f32.mrb[29].mxu0  ;;  %v3811_v16 = vld [vmem:[#allocation12 + $0x20] sm:$0xff]   ;;  %v3814_v44 = vld [vmem:[#allocation12 + $0x88] sm:$0xff]  }
 0x510   : > { %v2151_v46 = vpop.f32.mrb[30].mxu0  ;;  %3443 = vmatpush3.bf16.msra.mxu0 %v3811_v16  ;;  %v3817_v35 = vld [vmem:[#allocation12 + $0x70] sm:$0xff]  }
 0x511   : > { %v3567_v47 = vpop.f32.mrb[31].mxu0  ;;  %v2154_v48 = vsel %vm1858_vm4, %v2149_v45, -inf  ;;  %3444 = vmatprep.subr.bf16.mxu0 %v3813_v11  ;;  %v3818_v46 = vld [vmem:[#allocation12 + $0x90] sm:$0xff]  }
 0x512   : > { %2155 = vmax.xlane.f32.xlu1 %v2154_v48  ;;  %v3819_v47 = vld [vmem:[#allocation12 + $0x30] sm:$0xff]   ;;  %v3820_v48 = vld [vmem:[#allocation12 + $0xd8] sm:$0xff]  }
 0x587   : > { %v1861_v49 = vpop.xlane.xlu0 %1860 }
 0x588   : > { %v1862_v50 = vsub.f32 %v1853_v19, %v1861_v49  ;;  %v3821_v49 = vld [vmem:[#allocation12 + $0x78] sm:$0xff]  }
 0x58a   : > { %v1863_v30 = vmul.f32 1.442695, %v1862_v50  ;;  %v3822_v50 = vld [vmem:[#allocation12 + $0x98] sm:$0xff]  }
 0x58c   : > { %3870 = vpow2.f32 %v1863_v30  ;;  %v3823_v30 = vld [vmem:[#allocation12 + $0x38] sm:$0xff]  }
 0x58f   : > { %v1960_v53 = vpop.xlane.xlu1 %1959 }
 0x590   : > { %v1961_v54 = vsub.f32 %v1953_v25, %v1960_v53  ;;  %v3824_v53 = vld [vmem:[#allocation12 + $0xe0] sm:$0xff]  }
 0x592   : > { %v1962_v31 = vmul.f32 1.442695, %v1961_v54  ;;  %v3825_v54 = vld [vmem:[#allocation12 + $0xa0] sm:$0xff]  }
 0x594   : > { %3872 = vpow2.f32 %v1962_v31  ;;  %v3826_v31 = vld [vmem:[#allocation12 + $0xe8] sm:$0xff]  }
 0x596   : > { %v3871_v56 = vpop.eup %3870 }
 0x597   : > { %v2058_v36 = vpop.xlane.xlu0 %2057  ;;  %v1865_v57 = vsel %vm1858_vm4, %v3871_v56, 0.0 }
 0x598   : > { %v2059_v58 = vsub.f32 %v2051_v38, %v2058_v36  ;;  %1866 = vadd.xlane.f32.xlu0 %v1865_v57  ;;  %v3828_v36 = vld [vmem:[#allocation12 + $0xf0] sm:$0xff]  }
 0x599   : > { %v3829_v57 = vld [vmem:[#allocation12 + $0xb0] sm:$0xff]  }
 0x59a   : > { %v2060_v59 = vmul.f32 1.442695, %v2059_v58  ;;  %v3830_v58 = vld [vmem:[#allocation12 + $0xf8] sm:$0xff]  }
 0x59c   : > { %3874 = vpow2.f32 %v2060_v59  ;;  %v3831_v59 = vld [vmem:[#allocation12 + $0xb8] sm:$0xff]  }
 0x59e   : > { %v3873_v60 = vpop.eup %3872 }
 0x59f   : > { %v2156_v61 = vpop.xlane.xlu1 %2155  ;;  %v1964_v62 = vsel %vm1858_vm4, %v3873_v60, 0.0 }
 0x5a0   : > { %v2157_v34 = vsub.f32 %v2149_v45, %v2156_v61  ;;  %1965 = vadd.xlane.f32.xlu1 %v1964_v62  ;;  %v3815_v45 = vld [vmem:[#allocation12 + $0x28] sm:$0xff]  }
 0x5a1   : > { %3445 = vmatpush3.bf16.msra.mxu0 %v3815_v45 }
 0x5a2   : > { %v2158_v63 = vmul.f32 1.442695, %v2157_v34  ;;  %3446 = vmatprep.subr.bf16.mxu0 %v3817_v35  ;;  %v3343_v35 = vld [vmem:[%s4802_s11] ss:$0 sm:$0xff] }
 0x5a4   : > { %3876 = vpow2.f32 %v2158_v63 }
 0x5a5   : > { %3447 = vmatpush3.bf16.msra.mxu0 %v3819_v47 }
 0x5a6   : > { %v3875_v1 = vpop.eup %3874  ;;  %3448 = vmatprep.subr.bf16.mxu0 %v3821_v49 }
 0x5a7   : > { %v2062_v2 = vsel %vm1858_vm4, %v3875_v1, 0.0 }
 0x5a8   : > { %2063 = vadd.xlane.f32.xlu0 %v2062_v2 }
 0x5a9   : > { %3449 = vmatpush3.bf16.msra.mxu0 %v3823_v30 }
 0x5aa   : > { %3574 = vmatprep.subr.bf16.mxu0 %v4161_v0 }
 0x5ae   : > { %v3877_v3 = vpop.eup %3876 }
 0x5af   : > { %v2160_v4 = vsel %vm1858_vm4, %v3877_v3, 0.0 }
 0x5b0   : > { %2161 = vadd.xlane.f32.xlu1 %v2160_v4 }
 0x625   : > { %v1867_v17 = vpop.xlane.xlu0 %1866 }
 0x626   : > { %3878 = vrcp.f32 %v1867_v17  ;;  %v3832_v17 = vld [vmem:[%s4803_s12] sm:$0xff]  }
 0x62d   : > { %v1966_v19 = vpop.xlane.xlu1 %1965 }
 0x62e   : > { %3880 = vrcp.f32 %v1966_v19 }
 0x630   : > { %v3879_v20 = vpop.eup %3878 }
 0x631   : > { %v1869_v21 = vmul.f32 %v3879_v20, %v3871_v56  ;;  %v3827_v56 = vld [vmem:[#allocation12 + $0xa8] sm:$0xff]  }
 0x633   : > { %v1870_v22 = vpack.c.bf16 %v1869_v21, %v1869_v21 }
 0x635   : > { %3535 = vmatmul.mubr.msk.bf16.vlgmr.msra.gmra.mrb[16].mxu1 %vm1858_vm4, %v1870_v22  ;;  %v2064_v23 = vpop.xlane.xlu0 %2063  ;;  %v3833_v22 = vld [vmem:[%s4803_s12 + $0x8] sm:$0xff]  }
 0x636   : > { %3545 = vmatpush3.bf16.msra.mxu1 %v4610_v14  ;;  %3882 = vrcp.f32 %v2064_v23  ;;  %3546 = vmatprep.mubr.msk.bf16.mxu1 %vm4162_vm0, %v4161_v0  ;;  %v3834_v23 = vld [vmem:[%s4803_s12 + $0x10] sm:$0xff]  }
 0x637   : > { %3556 = vmatprep.subr.bf16.mxu1 %v4161_v0 }
 0x638   : > { %v3881_v24 = vpop.eup %3880 }
 0x639   : > { %v1968_v25 = vmul.f32 %v3881_v24, %v3873_v60  ;;  %v3835_v24 = vld [vmem:[%s4803_s12 + $0x18] sm:$0xff]  }
 0x63b   : > { %v1969_v26 = vpack.c.bf16 %v1968_v25, %v1968_v25  ;;  %v3836_v25 = vld [vmem:[%s4803_s12 + $0x20] sm:$0xff]  }
 0x63d   : > { %3547 = vmatmul.mubr.msk.bf16.vlgmr.msra.gmra.mrb[20].mxu1 %vm1858_vm4, %v1969_v26  ;;  %v2162_v27 = vpop.xlane.xlu1 %2161  ;;  %v3837_v26 = vld [vmem:[%s4803_s12 + $0x28] sm:$0xff]  }
 0x63e   : > { %3557 = vmatpush3.bf16.msra.mxu1 %v4608_v7  ;;  %3884 = vrcp.f32 %v2162_v27  ;;  %3558 = vmatprep.mubr.msk.bf16.mxu1 %vm4162_vm0, %v4161_v0  ;;  %v3838_v27 = vld [vmem:[%s4803_s12 + $0x30] sm:$0xff]  }
 0x63f   : > { %3568 = vmatprep.subr.bf16.mxu1 %v4161_v0 }
 0x640   : > { %v3883_v14 = vpop.eup %3882 }
 0x641   : > { %v2066_v28 = vmul.f32 %v3883_v14, %v3875_v1  ;;  %v3839_v14 = vld [vmem:[%s4803_s12 + $0x38] sm:$0xff]  }
 0x643   : > { %v2067_v29 = vpack.c.bf16 %v2066_v28, %v2066_v28  ;;  %v2559_v28 = vpack.c.bf16 %v4532_v42, %v4532_v42 }
 0x645   : > { %3559 = vmatmul.mubr.msk.bf16.vlgmr.msra.gmra.mrb[24].mxu1 %vm1858_vm4, %v2067_v29  ;;  %v3842_v29 = vld [vmem:[%s4804_s13 + $0x10] sm:$0xff]  }
 0x646   : > { %3569 = vmatpush3.bf16.msra.mxu1 %v4612_v15  ;;  %3570 = vmatprep.mubr.msk.bf16.mxu1 %vm4162_vm0, %v4161_v0  ;;  %v3816_v15 = vld [vmem:[#allocation12 + $0xd0] sm:$0xff]  }
 0x647   : > { %3456 = vmatprep.subr.bf16.mxu1 %v3808_v33  ;;  %v3843_v33 = vld [vmem:[%s4804_s13 + $0x18] sm:$0xff]  }
 0x648   : > { %v3885_v38 = vpop.eup %3884 }
 0x649   : > { %v2164_v7 = vmul.f32 %v3885_v38, %v3877_v3  ;;  %v3840_v3 = vld [vmem:[%s4804_s13] sm:$0xff]  }
 0x64a   : > { %v3844_v38 = vld [vmem:[%s4804_s13 + $0x20] sm:$0xff]  }
 0x64b   : > { %v2165_v41 = vpack.c.bf16 %v2164_v7, %v2164_v7  ;;  %v3845_v7 = vld [vmem:[%s4804_s13 + $0x28] sm:$0xff]  }
 0x64d   : > { %3571 = vmatmul.mubr.msk.bf16.vlgmr.msra.gmra.mrb[28].mxu1 %vm1858_vm4, %v2165_v41  ;;  %v3847_v41 = vld [vmem:[%s4804_s13 + $0x38] sm:$0xff]  }
 0x64e   : > { %3457 = vmatpush3.bf16.msra.mxu1 %v3810_v39  ;;  %v3846_v39 = vld [vmem:[%s4804_s13 + $0x30] sm:$0xff]  }
 0x64f   : > { %3458 = vmatprep.subr.bf16.mxu1 %v3812_v43 }
 0x652   : > { %3459 = vmatpush3.bf16.msra.mxu1 %v3814_v44 }
 0x653   : > { %3460 = vmatprep.subr.bf16.mxu1 %v3816_v15 }
 0x656   : > { %3461 = vmatpush3.bf16.msra.mxu1 %v3818_v46 }
 0x657   : > { %3462 = vmatprep.subr.bf16.mxu1 %v3820_v48 }
 0x65a   : > { %3463 = vmatpush3.bf16.msra.mxu1 %v3822_v50 }
 0x65b   : > { %3464 = vmatprep.subr.bf16.mxu1 %v3824_v53 }
 0x65e   : > { %3465 = vmatpush3.bf16.msra.mxu1 %v3825_v54 }
 0x65f   : > { %3466 = vmatprep.subr.bf16.mxu1 %v3826_v31 }
 0x662   : > { %3467 = vmatpush3.bf16.msra.mxu1 %v3827_v56 }
 0x663   : > { %3468 = vmatprep.subr.bf16.mxu1 %v3828_v36 }
 0x666   : > { %3469 = vmatpush3.bf16.msra.mxu1 %v3829_v57 }
 0x667   : > { %3470 = vmatprep.subr.bf16.mxu1 %v3830_v58  ;;  %v3848_v58 = vld [vmem:[%s4806_s15] sm:$0xff]  }
 0x66a   : > { %3471 = vmatpush3.bf16.msra.mxu1 %v3831_v59 }
 0x66b   : > { %3594 = vmatprep.subr.bf16.mxu1 %v4161_v0 }
 0x708   : > { %v1912_v60 = vpop.f32.mrb[16].mxu1 }
 0x709   : > { %v3536_v61 = vpop.f32.mrb[17].mxu1  ;;  %v2212_v4 = vpack.c.bf16 %v1912_v60, %v1912_v60  ;;  %v3392_v60 = vld [vmem:[%s4805_s14] ss:$0 sm:$0xff] }
 0x70a   : > { %v1915_v62 = vpop.f32.mrb[18].mxu1 }
 0x70b   : > { %v3537_v34 = vpop.f32.mrb[19].mxu1 }
 0x710   : > { %v2010_v63 = vpop.f32.mrb[20].mxu1 }
 0x711   : > { %v2213_v1 = vpack.c.bf16 %v2010_v63, %v2010_v63  ;;  %v3548_v2 = vpop.f32.mrb[21].mxu1 }
 0x712   : > { %v2013_v5 = vpop.f32.mrb[22].mxu1 }
 0x713   : > { %v3549_v37 = vpop.f32.mrb[23].mxu1  ;;  %2511 = vmatprep.mubr.bf16.mxu0 %v2213_v1 }
 0x714   : > { %2512 = vmatmul.mubr.bf16.vlgmr.msra.gmra.mrb[32].mxu0 %v2212_v4 }
 0x715   : > { %3575 = vmatpush3.bf16.msra.mxu0 %v3840_v3  ;;  %3590 = vmatprep.mubr.msk.bf16.mxu0 %vm4162_vm0, %v4161_v0 }
 0x716   : > { %3576 = vmatprep.subr.bf16.mxu0 %v4161_v0 }
 0x718   : > { %v2108_v8 = vpop.f32.mrb[24].mxu1 }
 0x719   : > { %v3560_v9 = vpop.f32.mrb[25].mxu1  ;;  %3577 = vmatpush3.bf16.msra.mxu0 %v3841_v6  ;;  %v2214_v19 = vpack.c.bf16 %v2108_v8, %v2108_v8 }
 0x71a   : > { %v2111_v10 = vpop.f32.mrb[26].mxu1  ;;  %3578 = vmatprep.subr.bf16.mxu0 %v4161_v0 }
 0x71b   : > { %v3561_v12 = vpop.f32.mrb[27].mxu1 }
 0x71c   : > { %v3849_v12 = vld [vmem:[%s4806_s15 + $0x8] sm:$0xff]  }
 0x71d   : > { %3579 = vmatpush3.bf16.msra.mxu0 %v3842_v29 }
 0x71e   : > { %3580 = vmatprep.subr.bf16.mxu0 %v4161_v0 }
 0x720   : > { %v2206_v40 = vpop.f32.mrb[28].mxu1 }
 0x721   : > { %v2215_v13 = vpack.c.bf16 %v2206_v40, %v2206_v40  ;;  %v3572_v16 = vpop.f32.mrb[29].mxu1  ;;  %3581 = vmatpush3.bf16.msra.mxu0 %v3843_v33  ;;  %v3851_v40 = vld [vmem:[%s4806_s15 + $0x18] sm:$0xff]  }
 0x722   : > { %v2209_v20 = vpop.f32.mrb[30].mxu1  ;;  %3582 = vmatprep.subr.bf16.mxu0 %v4161_v0  ;;  %v3853_v16 = vld [vmem:[%s4806_s15 + $0x28] sm:$0xff]  }
 0x723   : > { %v3573_v21 = vpop.f32.mrb[31].mxu1  ;;  %2551 = vmatprep.mubr.bf16.mxu1 %v2215_v13  ;;  %v3852_v13 = vld [vmem:[%s4806_s15 + $0x20] sm:$0xff]   ;;  %v3856_v20 = vld [vmem:[#allocation13] sm:$0xff]  }
 0x724   : > { %2552 = vmatmul.mubr.bf16.vlgmr.msra.gmra.mrb[32].mxu1 %v2214_v19  ;;  %v3855_v19 = vld [vmem:[%s4806_s15 + $0x38] sm:$0xff]  }
 0x725   : > { %3595 = vmatpush3.bf16.msra.mxu1 %v3832_v17  ;;  %3610 = vmatprep.mubr.msk.bf16.mxu1 %vm4162_vm0, %v4161_v0  ;;  %v3854_v17 = vld [vmem:[%s4806_s15 + $0x30] sm:$0xff]   ;;  %v3857_v21 = vld [vmem:[#allocation13 + $0x8] sm:$0xff]  }
 0x726   : > { %3596 = vmatprep.subr.bf16.mxu1 %v4161_v0  ;;  %3583 = vmatpush3.bf16.msra.mxu0 %v3844_v38 }
 0x727   : > { %3584 = vmatprep.subr.bf16.mxu0 %v4161_v0 }
 0x729   : > { %3597 = vmatpush3.bf16.msra.mxu1 %v3833_v22  ;;  %v3858_v22 = vld [vmem:[#allocation13 + $0x10] sm:$0xff]  }
 0x72a   : > { %3598 = vmatprep.subr.bf16.mxu1 %v4161_v0  ;;  %3585 = vmatpush3.bf16.msra.mxu0 %v3845_v7 }
 0x72b   : > { %3586 = vmatprep.subr.bf16.mxu0 %v4161_v0 }
 0x72d   : > { %3599 = vmatpush3.bf16.msra.mxu1 %v3834_v23  ;;  %v3859_v23 = vld [vmem:[#allocation13 + $0x18] sm:$0xff]  }
 0x72e   : > { %3600 = vmatprep.subr.bf16.mxu1 %v4161_v0  ;;  %3587 = vmatpush3.bf16.msra.mxu0 %v3846_v39  ;;  %v3894_v39 = vld [vmem:[#allocation2] sm:$0xff] }
 0x72f   : > { %3588 = vmatprep.subr.bf16.mxu0 %v4161_v0 }
 0x731   : > { %3601 = vmatpush3.bf16.msra.mxu1 %v3835_v24  ;;  %v3860_v24 = vld [vmem:[#allocation13 + $0x20] sm:$0xff]  }
 0x732   : > { %3602 = vmatprep.subr.bf16.mxu1 %v4161_v0  ;;  %3589 = vmatpush3.bf16.msra.mxu0 %v3847_v41  ;;  %v2804_v41 = vrot.slane %v3894_v39, %v1293_v51  ;;  %v3394_v51 = vld [vmem:[%s4807_s16] ss:$0 sm:$0xff] }
 0x733   : > { %3614 = vmatprep.subr.bf16.mxu0 %v4161_v0 }
 0x735   : > { %3603 = vmatpush3.bf16.msra.mxu1 %v3836_v25  ;;  %v3861_v25 = vld [vmem:[#allocation13 + $0x28] sm:$0xff]  }
 0x736   : > { %3604 = vmatprep.subr.bf16.mxu1 %v4161_v0 }
 0x739   : > { %3605 = vmatpush3.bf16.msra.mxu1 %v3837_v26 }
 0x73a   : > { %3606 = vmatprep.subr.bf16.mxu1 %v4161_v0 }
 0x73d   : > { %3607 = vmatpush3.bf16.msra.mxu1 %v3838_v27 }
 0x73e   : > { %3608 = vmatprep.subr.bf16.mxu1 %v4161_v0 }
 0x741   : > { %3609 = vmatpush3.bf16.msra.mxu1 %v3839_v14 }
 0x742   : > { %3634 = vmatprep.subr.bf16.mxu1 %v4161_v0 }
 0x744   : > { %3611 = vmatmul.mubr.bf16.vlgmr.msra.gmra.mrb[36].mxu1 %v2559_v28 }
 0x745   : > { %3650 = vmatprep.mubr.msk.bf16.mxu1 %vm4162_vm0, %v4161_v0  ;;  %3635 = vmatpush3.bf16.msra.mxu1 %v3856_v20 }
 0x746   : > { %3636 = vmatprep.subr.bf16.mxu1 %v4161_v0 }
 0x749   : > { %3637 = vmatpush3.bf16.msra.mxu1 %v3857_v21 }
 0x74a   : > { %3638 = vmatprep.subr.bf16.mxu1 %v4161_v0 }
 0x74d   : > { %3639 = vmatpush3.bf16.msra.mxu1 %v3858_v22 }
 0x74e   : > { %3640 = vmatprep.subr.bf16.mxu1 %v4161_v0 }
 0x751   : > { %3641 = vmatpush3.bf16.msra.mxu1 %v3859_v23 }
 0x752   : > { %3642 = vmatprep.subr.bf16.mxu1 %v4161_v0 }
 0x755   : > { %3643 = vmatpush3.bf16.msra.mxu1 %v3860_v24 }
 0x756   : > { %3644 = vmatprep.subr.bf16.mxu1 %v4161_v0 }
 0x759   : > { %3645 = vmatpush3.bf16.msra.mxu1 %v3861_v25 }
 0x75a   : > { %3646 = vmatprep.subr.bf16.mxu1 %v4161_v0 }
 0x7e7   : > { %v3450_v43 = vpop.f32.mrb[32].mxu0 }
 0x7e8   : > { %v3451_v11 = vpop.f32.mrb[33].mxu0 }
 0x7e9   : > { %v3452_v44 = vadd.f32 %v3451_v11, %v3450_v43  ;;  %v3453_v45 = vpop.f32.mrb[34].mxu0 }
 0x7ea   : > { %v3454_v15 = vpop.f32.mrb[35].mxu0 }
 0x7eb   : > { %v2514_v48 = vadd.f32 %v3452_v44, %v3343_v35  ;;  %v2809_v44 = vrot.slane %v3894_v39, %v1297_v55 }
 0x7f7   : > { %v3472_v46 = vpop.f32.mrb[32].mxu1 }
 0x7f8   : > { %v3473_v47 = vpop.f32.mrb[33].mxu1 }
 0x7f9   : > { %v3474_v49 = vadd.f32 %v3473_v47, %v3472_v46  ;;  %v3475_v50 = vpop.f32.mrb[34].mxu1  ;;  %v3862_v47 = vld [vmem:[#allocation13 + $0x30] sm:$0xff]  }
 0x7fa   : > { %v3476_v30 = vpop.f32.mrb[35].mxu1  ;;  %3647 = vmatpush3.bf16.msra.mxu1 %v3862_v47 }
 0x7fb   : > { %v2554_v53 = vadd.f32 %v3474_v49, %v2514_v48  ;;  %3648 = vmatprep.subr.bf16.mxu1 %v4161_v0  ;;  %v3863_v48 = vld [vmem:[#allocation13 + $0x38] sm:$0xff]  }
 0x7fd   : > { %v2576_v54 = vpack.c.bf16 %v2554_v53, %v2554_v53 }
 0x7fe   : > { %3649 = vmatpush3.bf16.msra.mxu1 %v3863_v48 }
 0x7ff   : > { %3591 = vmatmul.mubr.bf16.vlgmr.msra.gmra.mrb[36].mxu0 %v2576_v54 }
 0x800   : > { %3630 = vmatprep.mubr.msk.bf16.mxu0 %vm4162_vm0, %v4161_v0  ;;  %3615 = vmatpush3.bf16.msra.mxu0 %v3848_v58 }
 0x801   : > { %3616 = vmatprep.subr.bf16.mxu0 %v4161_v0 }
 0x804   : > { %3617 = vmatpush3.bf16.msra.mxu0 %v3849_v12 }
 0x805   : > { %3618 = vmatprep.subr.bf16.mxu0 %v4161_v0 }
 0x817   : > { %v2763_v31 = vpop.f32.mrb[36].mxu1 }
 0x818   : > { %v3612_v56 = vpop.f32.mrb[37].mxu1 }
 0x819   : > { %v2766_v36 = vpop.f32.mrb[38].mxu1  ;;  %v3403_v56 = vld [vmem:[%s4844_s27] ss:$0 sm:$0xff] }
 0x81a   : > { %v3613_v57 = vpop.f32.mrb[39].mxu1 }
 0x8d2   : > { %v2675_v59 = vpop.f32.mrb[36].mxu0 }
 0x8d3   : > { %v2764_v61 = vadd.f32 %v2763_v31, %v2675_v59  ;;  %v3592_v62 = vpop.f32.mrb[37].mxu0 }
 0x8d4   : > { %v2678_v34 = vpop.f32.mrb[38].mxu0 }
 0x8d5   : > { %v2776_v63 = vadd.f32 %v3392_v60, %v2764_v61  ;;  %v3593_v1 = vpop.f32.mrb[39].mxu0 }
 0x8d7   : > { %v3393_v2 = vmul.f32 -1.442695, %v2776_v63 }
 0x8d9   : > { %3886 = vpow2.f32 %v3393_v2 }
 0x8e3   : > { %v3887_v3 = vpop.eup %3886 }
 0x8e4   : > { %v2780_v4 = vadd.f32 1.0, %v3887_v3 }
 0x8e6   : > { %3888 = vrcp.f32 %v2780_v4 }
 0x8f0   : > { %v3889_v5 = vpop.eup %3888 }
 0x8f1   : > { %v2784_v37 = vsub.f32 1.0, %v3889_v5  ;;  %v2783_v6 = vmul.f32 %v3889_v5, %v4532_v42  ;;  %v3850_v42 = vld [vmem:[%s4806_s15 + $0x10] sm:$0xff]  }
 0x8f2   : > { %3619 = vmatpush3.bf16.msra.mxu0 %v3850_v42 }
 0x8f3   : > { %v2785_v8 = vmul.f32 %v2784_v37, %v2554_v53  ;;  %3620 = vmatprep.subr.bf16.mxu0 %v4161_v0  ;;  %v3054_v37 = vrot.slane %v3894_v39, %v1301_v52 }
 0x8f5   : > { %v4729_v9 = vadd.f32 %v2785_v8, %v2783_v6 }
 0x8f6   : > { %3621 = vmatpush3.bf16.msra.mxu0 %v3851_v40 }
 0x8f7   : > { %2787 = vadd.xlane.f32.xlu0 %v4729_v9  ;;  %v2790_v10 = vmul.f32 %v4729_v9, %v4729_v9  ;;  %3622 = vmatprep.subr.bf16.mxu0 %v4161_v0 }
 0x8f9   : > { %2791 = vadd.xlane.f32.xlu1 %v2790_v10 }
 0x8fa   : > { %3623 = vmatpush3.bf16.msra.mxu0 %v3852_v13 }
 0x8fb   : > { %3624 = vmatprep.subr.bf16.mxu0 %v4161_v0 }
 0x8fe   : > { %3625 = vmatpush3.bf16.msra.mxu0 %v3853_v16 }
 0x8ff   : > { %3626 = vmatprep.subr.bf16.mxu0 %v4161_v0 }
 0x902   : > { %3627 = vmatpush3.bf16.msra.mxu0 %v3854_v17 }
 0x903   : > { %3628 = vmatprep.subr.bf16.mxu0 %v4161_v0 }
 0x906   : > { %3629 = vmatpush3.bf16.msra.mxu0 %v3855_v19 }
 0x984   : > { %v2788_v26 = vpop.xlane.xlu0 %2787 }
 0x985   : > { %v2789_v27 = vmul.f32 0.03125, %v2788_v26 }
 0x986   : > { %v2792_v14 = vpop.xlane.xlu1 %2791 }
 0x987   : > { %v2794_v28 = vmul.f32 %v2789_v27, %v2789_v27  ;;  %v2793_v29 = vmul.f32 0.03125, %v2792_v14  ;;  %v2797_v43 = vsub.f32 %v4729_v9, %v2789_v27 }
 0x989   : > { %v2795_v33 = vsub.f32 %v2793_v29, %v2794_v28 }
 0x98b   : > { %v2796_v38 = vmax.f32 %v2795_v33, 0.0 }
 0x98d   : > { %v2798_v7 = vadd.f32 1e-05, %v2796_v38 }
 0x98f   : > { %3890 = vrsqrt.f32 %v2798_v7 }
 0x999   : > { %v3891_v11 = vpop.eup %3890 }
 0x99a   : > { %v2800_v45 = vmul.f32 %v3891_v11, %v2797_v43 }
 0x99c   : > { %v2805_v15 = vmul.f32 %v2804_v41, %v2800_v45 }
 0x99e   : > { %v2810_v35 = vadd.f32 %v2809_v44, %v2805_v15 }
 0x9a0   : > { %v2811_v46 = vpack.c.bf16 %v2810_v35, %v2810_v35 }
 0x9a2   : > { %3631 = vmatmul.mubr.bf16.vlgmr.msra.gmra.mrb[40].mxu0 %v2811_v46 }
 0xa75   : > { %v2917_v49 = vpop.f32.mrb[40].mxu0 }
 0xa76   : > { %v2918_v50 = vadd.f32 %v3394_v51, %v2917_v49  ;;  %v3632_v30 = vpop.f32.mrb[41].mxu0 }
 0xa77   : > { %v2920_v53 = vpop.f32.mrb[42].mxu0 }
 0xa78   : > { %v2923_v55 = vmax.f32 %v2918_v50, 0.0  ;;  %v3633_v54 = vpop.f32.mrb[43].mxu0 }
 0xa7a   : > { %v2924_v31 = vpack.c.bf16 %v2923_v55, %v2923_v55 }
 0xa7c   : > { %3651 = vmatmul.mubr.bf16.vlgmr.msra.gmra.mrb[40].mxu1 %v2924_v31 }
 0xb4f   : > { %v3030_v36 = vpop.f32.mrb[40].mxu1 }
 0xb50   : > { %v3031_v0 = vadd.f32 %v3403_v56, %v3030_v36  ;;  %v3652_v57 = vpop.f32.mrb[41].mxu1 }
 0xb51   : > { %v3033_v58 = vpop.f32.mrb[42].mxu1 }
 0xb52   : > { %v3036_v59 = vadd.f32 %v3031_v0, %v4729_v9  ;;  %v3653_v60 = vpop.f32.mrb[43].mxu1  ;;  %v3059_v9 = vrot.slane %v3894_v39, %v1305_v18 }
 0xb54   : > { %3037 = vadd.xlane.f32.xlu0 %v3036_v59  ;;  %v3040_v61 = vmul.f32 %v3036_v59, %v3036_v59 }
 0xb56   : > { %3041 = vadd.xlane.f32.xlu1 %v3040_v61 }
 0xbe1   : > { %v3038_v62 = vpop.xlane.xlu0 %3037 }
 0xbe2   : > { %v3039_v34 = vmul.f32 0.03125, %v3038_v62 }
 0xbe3   : > { %v3042_v63 = vpop.xlane.xlu1 %3041 }
 0xbe4   : > { %v3044_v1 = vmul.f32 %v3039_v34, %v3039_v34  ;;  %v3043_v2 = vmul.f32 0.03125, %v3042_v63  ;;  %v3047_v6 = vsub.f32 %v3036_v59, %v3039_v34 }
 0xbe6   : > { %v3045_v3 = vsub.f32 %v3043_v2, %v3044_v1 }
 0xbe8   : > { %v3046_v4 = vmax.f32 %v3045_v3, 0.0 }
 0xbea   : > { %v3048_v5 = vadd.f32 1e-05, %v3046_v4 }
 0xbec   : > { %3892 = vrsqrt.f32 %v3048_v5 }
 0xbf6   : > { %v3893_v8 = vpop.eup %3892 }
 0xbf7   : > { %v3050_v10 = vmul.f32 %v3893_v8, %v3047_v6 }
 0xbf9   : > { %v3055_v12 = vmul.f32 %v3054_v37, %v3050_v10 }
 0xbfb   : > { %v3060_v42 = vadd.f32 %v3059_v9, %v3055_v12 }
 0xbfd   : > { %3061 = vst [vmem:[%s737_s4] sm:$0xff] %v3060_v42 }
 0xbfe PF: > { %s4846_s28 = sld [smem:[#allocation20_spill]] }
 0xc04   : > { %s34_s0 = sadd.s32 1, %s4846_s28  }
 0xc05   : > { %p31_p1 = scmp.ge.s32.totalorder %s34_s0, 4  }
 0xc07   :  { %33 = sbr.rel (!%p31_p1) target bundleno = 14 (0xe), region = 165 }
 0xc0e   :  { %3081 = vsyncpa [#allocation3], 1 }
 0xc0f   :  { %3083 = vsyncpa [#allocation3 + $0x1], 1 }
 0xc10   :  { %3084 = vsyncpa [#allocation5], 1 }
 0xc11   :  { %3085 = vsyncpa [#allocation8], 1 }
 0xc12   :  { %3086 = vsyncpa [#allocation11], 1 }
 0xc13   :  { %3087 = vsyncpa [#allocation14], 1 }

</bundles_post_ra>
